<compile_context>
chip_gen: v5e
topology: v5e:2x2
jax: 0.10.0
libtpu: 0.0.40
codegen_flags: <defaults>
</compile_context>

<pallas_src>
import functools

import numpy as np

import jax
import jax.numpy as jnp
from jax.experimental import pallas as pl
from jax.experimental.pallas import tpu as pltpu


# --------------------- static interpolation / pooling operators ---------------------

def _adaptive_pool_matrix(in_size, out_size):
    """1-D adaptive-average-pool operator, shape (out_size, in_size). PyTorch semantics."""
    A = np.zeros((out_size, in_size), np.float32)
    for i in range(out_size):
        s = (i * in_size) // out_size
        e = -((-(i + 1) * in_size) // out_size)  # ceil
        A[i, s:e] = 1.0 / (e - s)
    return A


def _bilinear_matrix(out_size, in_size):
    """1-D bilinear upsample operator (align_corners=True), shape (out_size, in_size)."""
    U = np.zeros((out_size, in_size), np.float32)
    if in_size == 1 or out_size == 1:
        U[:, 0] = 1.0
        return U
    scale = (in_size - 1) / (out_size - 1)
    for o in range(out_size):
        src = o * scale
        i0 = min(int(np.floor(src)), in_size - 1)
        i1 = min(i0 + 1, in_size - 1)
        frac = src - i0
        U[o, i0] += 1.0 - frac
        U[o, i1] += frac
    return U


def _build_operators(H, W, bins, red):
    """bf16 pooling (HW_pad, S_pad) / upsample (S_pad, HW_pad) operators + block-diag mask.

    Only the TOTAL bin axis S = sum(b*b) is padded (to >=128); per-bin blocks are
    packed densely.  Padded rows/cols are zero.
    """
    HW = H * W
    HW_pad = -(-HW // 128) * 128
    cells = [b * b for b in bins]
    S = sum(cells)
    S_pad = max(128, -(-S // 128) * 128)

    at = np.zeros((HW_pad, S_pad), np.float32)              # pooling:   x (.., HW) @ at
    ut = np.zeros((S_pad, HW_pad), np.float32)              # upsample:  feat (.., S) @ ut
    mask = np.zeros((len(bins) * red, S_pad), np.float32)   # block-diagonal structure
    off = 0
    for bi, b in enumerate(bins):
        a2d = np.kron(_adaptive_pool_matrix(H, b), _adaptive_pool_matrix(W, b))  # (b*b, HW)
        u2d = np.kron(_bilinear_matrix(H, b), _bilinear_matrix(W, b))            # (HW, b*b)
        at[:HW, off:off + b * b] = a2d.T
        ut[off:off + b * b, :HW] = u2d.T
        mask[bi * red:(bi + 1) * red, off:off + b * b] = 1.0
        off += b * b

    return (jnp.asarray(at, jnp.bfloat16), jnp.asarray(ut, jnp.bfloat16),
            jnp.asarray(mask, jnp.float32), HW_pad, S_pad)


def _pick_tile(total, bytes_per_col, budget_bytes, cap=2048):
    """Largest 128-multiple dividing `total` whose per-tile VMEM stays in budget."""
    assert total % 128 == 0
    best = 128
    for t in range(128, min(total, cap) + 1, 128):
        if total % t == 0 and t * bytes_per_col <= budget_bytes:
            best = t
    return best


# --------------------------------- Pallas kernels -----------------------------------

def _make_pool_conv_bn_relu_kernel(N, C):
    """Fused adaptive-avg-pool (all bins, all images) + stacked 1x1 conv + BN + ReLU."""

    def kernel(x_ref, at_ref, w_ref, s_ref, b_ref, m_ref, o_ref, acc_ref):
        k = pl.program_id(0)

        @pl.when(k == 0)
        def _init():
            acc_ref[...] = jnp.zeros_like(acc_ref)

        # Partial pooling for every bin / every image in one MXU push:
        #   acc (N*C, S) += x_tile (N*C, k_tile) @ At_tile (k_tile, S)
        acc_ref[...] += jnp.dot(x_ref[...].astype(jnp.bfloat16), at_ref[...],
                                preferred_element_type=jnp.float32)

        @pl.when(k == pl.num_programs(0) - 1)
        def _finalize():
            for n in range(N):  # N is small and static
                pooled = acc_ref[n * C:(n + 1) * C, :].astype(jnp.bfloat16)   # (C, S)
                y = jnp.dot(w_ref[...], pooled,
                            preferred_element_type=jnp.float32)              # (B*red, S)
                y = jnp.maximum(y * s_ref[...] + b_ref[...], 0.0)            # BN + ReLU
                # Mask AFTER ReLU so off-diagonal / padded columns are exactly zero
                # (they would otherwise hold ReLU(bias) and leak through Stage 2).
                o_ref[n] = (y * m_ref[...]).astype(o_ref.dtype)

    return kernel


def _upsample_concat_kernel(x_ref, f_ref, ut_ref, o_ref):
    """Bilinear upsample of ALL branches as one block-diagonal matmul + channel concat."""
    C = x_ref.shape[1]
    o_ref[0, :C, :] = x_ref[0]                                # exact f32 passthrough
    o_ref[0, C:, :] = jnp.dot(f_ref[0], ut_ref[...],
                              preferred_element_type=jnp.float32)


# ----------------------------------- forward pass -----------------------------------

@functools.partial(jax.jit, static_argnames=("bins",))
def ppm_forward(x, w_all, scale_all, bias_all, bins):
    """PPM forward (eval mode).

    x:         (N, C_in, H, W) float32 (NCHW, like PyTorch)
    w_all:     (B, red, C_in)  1x1 conv weights per bin
    scale_all: (B, red, 1)     folded BN scale  (gamma / sqrt(var + eps))
    bias_all:  (B, red, 1)     folded BN bias   (beta - mean * scale)
    returns    (N, C_in + B*red, H, W) float32
    """
    N, C, H, W = x.shape
    B, red, _ = w_all.shape
    HW = H * W
    C_out = C + B * red

    at_all, ut_all, mask, HW_pad, S = _build_operators(H, W, bins, red)

    x_flat = x.reshape(N, C, HW)
    if HW_pad != HW:
        x_flat = jnp.pad(x_flat, ((0, 0), (0, 0), (0, HW_pad - HW)))
    x_2d = x_flat.reshape(N * C, HW_pad)

    w_stk = w_all.reshape(B * red, C).astype(jnp.bfloat16)    # stacked conv weights
    scale = scale_all.reshape(B * red, 1)
    bias = bias_all.reshape(B * red, 1)

    # Tile sizes from a VMEM budget (double-buffered inputs+outputs), safe on
    # v5e (32 MiB scoped), v6e (128 MiB) and v7x (64 MiB physical).
    TILE_BUDGET = 24 * 1024 * 1024
    k_tile = _pick_tile(HW_pad, 2 * (N * C * 4 + S * 2), TILE_BUDGET)
    m_tile = _pick_tile(HW_pad, 2 * (C * 4 + S * 2 + C_out * 4), TILE_BUDGET)
    VMEM_LIMIT = 48 * 1024 * 1024

    # ---- Stage 1: pooled features for all bins/images, conv + BN + ReLU epilogue ----
    feat = pl.pallas_call(
        _make_pool_conv_bn_relu_kernel(N, C),
        out_shape=jax.ShapeDtypeStruct((N, B * red, S), jnp.bfloat16),
        grid_spec=pltpu.PrefetchScalarGridSpec(
            num_scalar_prefetch=0,
            grid=(HW_pad // k_tile,),                                   # spatial reduction
            in_specs=[
                pl.BlockSpec((N * C, k_tile), lambda k: (0, k)),        # x tile (all images)
                pl.BlockSpec((k_tile, S), lambda k: (k, 0)),            # bf16 pooling op tile
                pl.BlockSpec((B * red, C), lambda k: (0, 0)),           # stacked conv weights
                pl.BlockSpec((B * red, 1), lambda k: (0, 0)),           # BN scale
                pl.BlockSpec((B * red, 1), lambda k: (0, 0)),           # BN bias
                pl.BlockSpec((B * red, S), lambda k: (0, 0)),           # block-diag mask
            ],
            out_specs=pl.BlockSpec((N, B * red, S), lambda k: (0, 0, 0)),
            scratch_shapes=[pltpu.VMEM((N * C, S), jnp.float32)],       # f32 pool accumulator
        ),
        compiler_params=pltpu.CompilerParams(
            dimension_semantics=("arbitrary",),
            vmem_limit_bytes=VMEM_LIMIT),
    )(x_2d, at_all, w_stk, scale, bias, mask)

    # ---- Stage 2: one block-diagonal upsample matmul + concat, lane-dense stores ----
    out_flat = pl.pallas_call(
        _upsample_concat_kernel,
        out_shape=jax.ShapeDtypeStruct((N, C_out, HW_pad), jnp.float32),
        grid_spec=pltpu.PrefetchScalarGridSpec(
            num_scalar_prefetch=0,
            grid=(HW_pad // m_tile, N),                                 # n innermost: Ut reused
            in_specs=[
                pl.BlockSpec((1, C, m_tile), lambda m, n: (n, 0, m)),   # x passthrough tile
                pl.BlockSpec((1, B * red, S), lambda m, n: (n, 0, 0)),  # bf16 branch features
                pl.BlockSpec((S, m_tile), lambda m, n: (0, m)),         # bf16 upsample op tile
            ],
            out_specs=pl.BlockSpec((1, C_out, m_tile), lambda m, n: (n, 0, m)),
        ),
        compiler_params=pltpu.CompilerParams(
            dimension_semantics=("parallel", "parallel"),
            vmem_limit_bytes=VMEM_LIMIT),
    )(x_flat, feat, ut_all)

    if HW_pad != HW:
        out_flat = out_flat[:, :, :HW]
    return out_flat.reshape(N, C_out, H, W)


# ------------------------------------ parameters ------------------------------------

def make_ppm_params(key, in_dim, red, bins, eps=1e-5):
    B = len(bins)
    ks = jax.random.split(key, 5 * B)
    ws, scales, biases, bn_raw = [], [], [], []
    for i in range(B):
        w = 0.1 * jax.random.normal(ks[5 * i], (red, in_dim), jnp.float32)
        gamma = 0.5 + jax.random.uniform(ks[5 * i + 1], (red,), jnp.float32)
        beta = 0.1 * jax.random.normal(ks[5 * i + 2], (red,), jnp.float32)
        mean = 0.1 * jax.random.normal(ks[5 * i + 3], (red,), jnp.float32)
        var = 0.5 + jax.random.uniform(ks[5 * i + 4], (red,), jnp.float32)
        scale = gamma / jnp.sqrt(var + eps)
        bias = beta - mean * scale
        ws.append(w)
        scales.append(scale[:, None])
        biases.append(bias[:, None])
        bn_raw.append((gamma, beta, mean, var))
    return {"w": jnp.stack(ws), "scale": jnp.stack(scales),
            "bias": jnp.stack(biases), "bn": bn_raw}


# --------------------------------- pure-JAX reference --------------------------------

def _upsample_ref(f, H, W):
    N, C, b, _ = f.shape
    if b == 1:
        return jnp.broadcast_to(f, (N, C, H, W))
    ys = jnp.linspace(0.0, b - 1.0, H)
    xs = jnp.linspace(0.0, b - 1.0, W)
    y0 = jnp.floor(ys).astype(jnp.int32)
    y1 = jnp.minimum(y0 + 1, b - 1)
    wy = ys - y0
    x0 = jnp.floor(xs).astype(jnp.int32)
    x1 = jnp.minimum(x0 + 1, b - 1)
    wx = xs - x0
    top = f[:, :, y0, :]
    bot = f[:, :, y1, :]
    fy = top * (1.0 - wy)[None, None, :, None] + bot * wy[None, None, :, None]
    left = fy[:, :, :, x0]
    right = fy[:, :, :, x1]
    return left * (1.0 - wx)[None, None, None, :] + right * wx[None, None, None, :]


def ppm_reference(x, params, bins, eps=1e-5):
    N, C, H, W = x.shape
    outs = [x]
    for bi, b in enumerate(bins):
        rows = []
        for i in range(b):
            hs, he = (i * H) // b, -((-(i + 1) * H) // b)
            cols = []
            for j in range(b):
                ws_, we = (j * W) // b, -((-(j + 1) * W) // b)
                cols.append(jnp.mean(x[:, :, hs:he, ws_:we], axis=(2, 3)))
            rows.append(jnp.stack(cols, axis=-1))
        pooled = jnp.stack(rows, axis=-2)                        # (N, C, b, b)
        y = jnp.einsum("rc,ncij->nrij", params["w"][bi], pooled)
        gamma, beta, mean, var = params["bn"][bi]
        y = (y - mean[None, :, None, None]) / jnp.sqrt(var + eps)[None, :, None, None]
        y = y * gamma[None, :, None, None] + beta[None, :, None, None]
        y = jnp.maximum(y, 0.0)
        outs.append(_upsample_ref(y, H, W))
    return jnp.concatenate(outs, axis=1)


# ---------------------------------------- main ---------------------------------------

if __name__ == "__main__":
    N, in_dim, H, W = 2, 32, 32, 32
    reduction_dim = 16
    bins = (1, 2, 3, 6)

    key = jax.random.PRNGKey(0)
    kx, kp = jax.random.split(key)
    x = jax.random.normal(kx, (N, in_dim, H, W), jnp.float32)
    params = make_ppm_params(kp, in_dim, reduction_dim, bins)

    out = ppm_forward(x, params["w"], params["scale"], params["bias"], bins=bins)
    out = jax.block_until_ready(out)

    assert out.shape == (N, in_dim + len(bins) * reduction_dim, H, W)
    assert bool(jnp.array_equal(out[:, :in_dim], x))          # x passthrough is exact

    ref = ppm_reference(x, params, bins)
    err = float(jnp.max(jnp.abs(out - ref)))
    assert err < 5e-2, f"max abs err {err}"                   # bf16 MXU / f32 epilogue

    print("KERNEL_OK")
</pallas_src>

<mosaic_0001>
module attributes {stable_mosaic.version = 11 : i64} {
  func.func @kernel(%arg0: i32, %arg1: memref<64x1024xf32, #tpu.memory_space<vmem>>, %arg2: memref<1024x128xbf16, #tpu.memory_space<vmem>>, %arg3: memref<64x32xbf16, #tpu.memory_space<vmem>>, %arg4: memref<64x1xf32, #tpu.memory_space<vmem>>, %arg5: memref<64x1xf32, #tpu.memory_space<vmem>>, %arg6: memref<64x128xf32, #tpu.memory_space<vmem>>, %arg7: memref<2x64x128xbf16, #tpu.memory_space<vmem>>, %arg8: memref<64x128xf32, #tpu.memory_space<vmem>>) attributes {dimension_semantics = [#tpu.dimension_semantics<arbitrary>], iteration_bounds = array<i64: 1>, scalar_prefetch = 0 : i64, scratch_operands = 1 : i64, tpu.core_type = #tpu.core_type<tc>, window_params = [{transform_indices = @transform_0, window_bounds = array<i64: 64, 1024>}, {transform_indices = @transform_1, window_bounds = array<i64: 1024, 128>}, {pipeline_mode = #tpu.pipeline_mode<synchronous>, transform_indices = @transform_2, window_bounds = array<i64: 64, 32>}, {pipeline_mode = #tpu.pipeline_mode<synchronous>, transform_indices = @transform_3, window_bounds = array<i64: 64, 1>}, {pipeline_mode = #tpu.pipeline_mode<synchronous>, transform_indices = @transform_4, window_bounds = array<i64: 64, 1>}, {pipeline_mode = #tpu.pipeline_mode<synchronous>, transform_indices = @transform_5, window_bounds = array<i64: 64, 128>}, {pipeline_mode = #tpu.pipeline_mode<synchronous>, transform_indices = @transform_6, window_bounds = array<i64: 2, 64, 128>}]} {
    %c0_i32 = arith.constant 0 : i32
    %0 = arith.cmpi eq, %arg0, %c0_i32 : i32
    %1 = arith.extui %0 : i1 to i32
    %c0_i32_0 = arith.constant 0 : i32
    %2 = arith.cmpi ne, %1, %c0_i32_0 : i32
    scf.if %2 {
      %cst_10 = arith.constant 0.000000e+00 : f32
      %13 = vector.broadcast %cst_10 : f32 to vector<64x128xf32>
      %c0_11 = arith.constant 0 : index
      %c0_12 = arith.constant 0 : index
      %14 = vector.load %arg8[%c0_11, %c0_12] : memref<64x128xf32, #tpu.memory_space<vmem>>, vector<64x128xf32>
      tpu.vector_store %arg8[%c0_11, %c0_12], %13 {strides = array<i32>} : memref<64x128xf32, #tpu.memory_space<vmem>>, vector<64x128xf32>,
    } else {
    }
    %c0 = arith.constant 0 : index
    %c0_1 = arith.constant 0 : index
    %3 = vector.load %arg8[%c0, %c0_1] : memref<64x128xf32, #tpu.memory_space<vmem>>, vector<64x128xf32>
    %c0_2 = arith.constant 0 : index
    %c0_3 = arith.constant 0 : index
    %4 = vector.load %arg1[%c0_2, %c0_3] : memref<64x1024xf32, #tpu.memory_space<vmem>>, vector<64x1024xf32>
    %5 = arith.truncf %4 : vector<64x1024xf32> to vector<64x1024xbf16>
    %c0_4 = arith.constant 0 : index
    %c0_5 = arith.constant 0 : index
    %6 = vector.load %arg2[%c0_4, %c0_5] : memref<1024x128xbf16, #tpu.memory_space<vmem>>, vector<1024x128xbf16>
    %cst = arith.constant dense<0.000000e+00> : vector<64x128xf32>
    %7 = tpu.matmul %5, %6, %cst {dimension_numbers = #tpu.dot_dimension_numbers<[1], [0], [0], [1], [0, 0, 1, 1], [], []>} : vector<64x1024xbf16>, vector<1024x128xbf16>, vector<64x128xf32> -> vector<64x128xf32>
    %8 = arith.addf %3, %7 : vector<64x128xf32>
    %c0_6 = arith.constant 0 : index
    %c0_7 = arith.constant 0 : index
    %9 = vector.load %arg8[%c0_6, %c0_7] : memref<64x128xf32, #tpu.memory_space<vmem>>, vector<64x128xf32>
    tpu.vector_store %arg8[%c0_6, %c0_7], %8 {strides = array<i32>} : memref<64x128xf32, #tpu.memory_space<vmem>>, vector<64x128xf32>,
    %c0_i32_8 = arith.constant 0 : i32
    %10 = arith.cmpi eq, %arg0, %c0_i32_8 : i32
    %11 = arith.extui %10 : i1 to i32
    %c0_i32_9 = arith.constant 0 : i32
    %12 = arith.cmpi ne, %11, %c0_i32_9 : i32
    scf.if %12 {
      %c0_10 = arith.constant 0 : index
      %c0_11 = arith.constant 0 : index
      %13 = vector.load %arg8[%c0_10, %c0_11] : memref<64x128xf32, #tpu.memory_space<vmem>>, vector<32x128xf32>
      %14 = arith.truncf %13 : vector<32x128xf32> to vector<32x128xbf16>
      %c0_12 = arith.constant 0 : index
      %c0_13 = arith.constant 0 : index
      %15 = vector.load %arg3[%c0_12, %c0_13] : memref<64x32xbf16, #tpu.memory_space<vmem>>, vector<64x32xbf16>
      %cst_14 = arith.constant dense<0.000000e+00> : vector<64x128xf32>
      %16 = tpu.matmul %15, %14, %cst_14 {dimension_numbers = #tpu.dot_dimension_numbers<[1], [0], [0], [1], [0, 0, 1, 1], [], []>} : vector<64x32xbf16>, vector<32x128xbf16>, vector<64x128xf32> -> vector<64x128xf32>
      %c0_15 = arith.constant 0 : index
      %c0_16 = arith.constant 0 : index
      %17 = vector.load %arg4[%c0_15, %c0_16] : memref<64x1xf32, #tpu.memory_space<vmem>>, vector<64x1xf32>
      %18 = vector.broadcast %17 : vector<64x1xf32> to vector<64x128xf32>
      %19 = arith.mulf %16, %18 : vector<64x128xf32>
      %c0_17 = arith.constant 0 : index
      %c0_18 = arith.constant 0 : index
      %20 = vector.load %arg5[%c0_17, %c0_18] : memref<64x1xf32, #tpu.memory_space<vmem>>, vector<64x1xf32>
      %21 = vector.broadcast %20 : vector<64x1xf32> to vector<64x128xf32>
      %22 = arith.addf %19, %21 : vector<64x128xf32>
      %cst_19 = arith.constant 0.000000e+00 : f32
      %23 = vector.broadcast %cst_19 : f32 to vector<64x128xf32>
      %24 = arith.maximumf %22, %23 : vector<64x128xf32>
      %c0_20 = arith.constant 0 : index
      %c0_21 = arith.constant 0 : index
      %25 = vector.load %arg6[%c0_20, %c0_21] : memref<64x128xf32, #tpu.memory_space<vmem>>, vector<64x128xf32>
      %26 = arith.mulf %24, %25 : vector<64x128xf32>
      %27 = arith.truncf %26 : vector<64x128xf32> to vector<64x128xbf16>
      %c0_22 = arith.constant 0 : index
      %c0_23 = arith.constant 0 : index
      %c0_24 = arith.constant 0 : index
      %28 = vector.load %arg7[%c0_22, %c0_23, %c0_24] : memref<2x64x128xbf16, #tpu.memory_space<vmem>>, vector<1x64x128xbf16>
      %29 = vector.shape_cast %28 : vector<1x64x128xbf16> to vector<64x128xbf16>
      %30 = vector.shape_cast %27 : vector<64x128xbf16> to vector<1x64x128xbf16>
      tpu.vector_store %arg7[%c0_22, %c0_23, %c0_24], %30 {strides = array<i32>} : memref<2x64x128xbf16, #tpu.memory_space<vmem>>, vector<1x64x128xbf16>,
      %c32 = arith.constant 32 : index
      %c0_25 = arith.constant 0 : index
      %31 = vector.load %arg8[%c32, %c0_25] : memref<64x128xf32, #tpu.memory_space<vmem>>, vector<32x128xf32>
      %32 = arith.truncf %31 : vector<32x128xf32> to vector<32x128xbf16>
      %c0_26 = arith.constant 0 : index
      %c0_27 = arith.constant 0 : index
      %33 = vector.load %arg3[%c0_26, %c0_27] : memref<64x32xbf16, #tpu.memory_space<vmem>>, vector<64x32xbf16>
      %cst_28 = arith.constant dense<0.000000e+00> : vector<64x128xf32>
      %34 = tpu.matmul %33, %32, %cst_28 {dimension_numbers = #tpu.dot_dimension_numbers<[1], [0], [0], [1], [0, 0, 1, 1], [], []>} : vector<64x32xbf16>, vector<32x128xbf16>, vector<64x128xf32> -> vector<64x128xf32>
      %c0_29 = arith.constant 0 : index
      %c0_30 = arith.constant 0 : index
      %35 = vector.load %arg4[%c0_29, %c0_30] : memref<64x1xf32, #tpu.memory_space<vmem>>, vector<64x1xf32>
      %36 = vector.broadcast %35 : vector<64x1xf32> to vector<64x128xf32>
      %37 = arith.mulf %34, %36 : vector<64x128xf32>
      %c0_31 = arith.constant 0 : index
      %c0_32 = arith.constant 0 : index
      %38 = vector.load %arg5[%c0_31, %c0_32] : memref<64x1xf32, #tpu.memory_space<vmem>>, vector<64x1xf32>
      %39 = vector.broadcast %38 : vector<64x1xf32> to vector<64x128xf32>
      %40 = arith.addf %37, %39 : vector<64x128xf32>
      %cst_33 = arith.constant 0.000000e+00 : f32
      %41 = vector.broadcast %cst_33 : f32 to vector<64x128xf32>
      %42 = arith.maximumf %40, %41 : vector<64x128xf32>
      %c0_34 = arith.constant 0 : index
      %c0_35 = arith.constant 0 : index
      %43 = vector.load %arg6[%c0_34, %c0_35] : memref<64x128xf32, #tpu.memory_space<vmem>>, vector<64x128xf32>
      %44 = arith.mulf %42, %43 : vector<64x128xf32>
      %45 = arith.truncf %44 : vector<64x128xf32> to vector<64x128xbf16>
      %c1 = arith.constant 1 : index
      %c0_36 = arith.constant 0 : index
      %c0_37 = arith.constant 0 : index
      %46 = vector.load %arg7[%c1, %c0_36, %c0_37] : memref<2x64x128xbf16, #tpu.memory_space<vmem>>, vector<1x64x128xbf16>
      %47 = vector.shape_cast %46 : vector<1x64x128xbf16> to vector<64x128xbf16>
      %48 = vector.shape_cast %45 : vector<64x128xbf16> to vector<1x64x128xbf16>
      tpu.vector_store %arg7[%c1, %c0_36, %c0_37], %48 {strides = array<i32>} : memref<2x64x128xbf16, #tpu.memory_space<vmem>>, vector<1x64x128xbf16>,
    } else {
    }
    return
  }
  func.func @transform_0(%arg0: i32) -> (i32, i32) {
    %c0_i32 = arith.constant 0 : i32
    %c0_i32_0 = arith.constant 0 : i32
    return %c0_i32, %arg0 : i32, i32
  }
  func.func @transform_1(%arg0: i32) -> (i32, i32) {
    %c0_i32 = arith.constant 0 : i32
    %c0_i32_0 = arith.constant 0 : i32
    return %arg0, %c0_i32 : i32, i32
  }
  func.func @transform_2(%arg0: i32) -> (i32, i32) {
    %c0_i32 = arith.constant 0 : i32
    %c0_i32_0 = arith.constant 0 : i32
    %c0_i32_1 = arith.constant 0 : i32
    return %c0_i32, %c0_i32_0 : i32, i32
  }
  func.func @transform_3(%arg0: i32) -> (i32, i32) {
    %c0_i32 = arith.constant 0 : i32
    %c0_i32_0 = arith.constant 0 : i32
    %c0_i32_1 = arith.constant 0 : i32
    return %c0_i32, %c0_i32_0 : i32, i32
  }
  func.func @transform_4(%arg0: i32) -> (i32, i32) {
    %c0_i32 = arith.constant 0 : i32
    %c0_i32_0 = arith.constant 0 : i32
    %c0_i32_1 = arith.constant 0 : i32
    return %c0_i32, %c0_i32_0 : i32, i32
  }
  func.func @transform_5(%arg0: i32) -> (i32, i32) {
    %c0_i32 = arith.constant 0 : i32
    %c0_i32_0 = arith.constant 0 : i32
    %c0_i32_1 = arith.constant 0 : i32
    return %c0_i32, %c0_i32_0 : i32, i32
  }
  func.func @transform_6(%arg0: i32) -> (i32, i32, i32) {
    %c0_i32 = arith.constant 0 : i32
    %c0_i32_0 = arith.constant 0 : i32
    %c0_i32_1 = arith.constant 0 : i32
    %c0_i32_2 = arith.constant 0 : i32
    return %c0_i32, %c0_i32_0, %c0_i32_1 : i32, i32, i32
  }
}

module attributes {stable_mosaic.version = 11 : i64} {
  func.func @_upsample_concat_kernel(%arg0: i32, %arg1: i32, %arg2: memref<1x32x1024xf32, #tpu.memory_space<vmem>>, %arg3: memref<1x64x128xbf16, #tpu.memory_space<vmem>>, %arg4: memref<128x1024xbf16, #tpu.memory_space<vmem>>, %arg5: memref<1x96x1024xf32, #tpu.memory_space<vmem>>) attributes {dimension_semantics = [#tpu.dimension_semantics<parallel>, #tpu.dimension_semantics<parallel>], iteration_bounds = array<i64: 1, 2>, scalar_prefetch = 0 : i64, scratch_operands = 0 : i64, tpu.core_type = #tpu.core_type<tc>, window_params = [{transform_indices = @transform_0, window_bounds = array<i64: 1, 32, 1024>}, {transform_indices = @transform_1, window_bounds = array<i64: 1, 64, 128>}, {transform_indices = @transform_2, window_bounds = array<i64: 128, 1024>}, {transform_indices = @transform_3, window_bounds = array<i64: 1, 96, 1024>}]} {
    %c0 = arith.constant 0 : index
    %c0_0 = arith.constant 0 : index
    %c0_1 = arith.constant 0 : index
    %0 = vector.load %arg2[%c0, %c0_0, %c0_1] : memref<1x32x1024xf32, #tpu.memory_space<vmem>>, vector<1x32x1024xf32>
    %1 = vector.shape_cast %0 : vector<1x32x1024xf32> to vector<32x1024xf32>
    %c0_2 = arith.constant 0 : index
    %c0_3 = arith.constant 0 : index
    %c0_4 = arith.constant 0 : index
    %2 = vector.load %arg5[%c0_2, %c0_3, %c0_4] : memref<1x96x1024xf32, #tpu.memory_space<vmem>>, vector<1x32x1024xf32>
    %3 = vector.shape_cast %2 : vector<1x32x1024xf32> to vector<32x1024xf32>
    %4 = vector.shape_cast %1 : vector<32x1024xf32> to vector<1x32x1024xf32>
    tpu.vector_store %arg5[%c0_2, %c0_3, %c0_4], %4 {strides = array<i32>} : memref<1x96x1024xf32, #tpu.memory_space<vmem>>, vector<1x32x1024xf32>,
    %c0_5 = arith.constant 0 : index
    %c0_6 = arith.constant 0 : index
    %c0_7 = arith.constant 0 : index
    %5 = vector.load %arg3[%c0_5, %c0_6, %c0_7] : memref<1x64x128xbf16, #tpu.memory_space<vmem>>, vector<1x64x128xbf16>
    %6 = vector.shape_cast %5 : vector<1x64x128xbf16> to vector<64x128xbf16>
    %c0_8 = arith.constant 0 : index
    %c0_9 = arith.constant 0 : index
    %7 = vector.load %arg4[%c0_8, %c0_9] : memref<128x1024xbf16, #tpu.memory_space<vmem>>, vector<128x1024xbf16>
    %cst = arith.constant dense<0.000000e+00> : vector<64x1024xf32>
    %8 = tpu.matmul %6, %7, %cst {dimension_numbers = #tpu.dot_dimension_numbers<[1], [0], [0], [1], [0, 0, 1, 1], [], []>} : vector<64x128xbf16>, vector<128x1024xbf16>, vector<64x1024xf32> -> vector<64x1024xf32>
    %c0_10 = arith.constant 0 : index
    %c32 = arith.constant 32 : index
    %c0_11 = arith.constant 0 : index
    %9 = vector.load %arg5[%c0_10, %c32, %c0_11] : memref<1x96x1024xf32, #tpu.memory_space<vmem>>, vector<1x64x1024xf32>
    %10 = vector.shape_cast %9 : vector<1x64x1024xf32> to vector<64x1024xf32>
    %11 = vector.shape_cast %8 : vector<64x1024xf32> to vector<1x64x1024xf32>
    tpu.vector_store %arg5[%c0_10, %c32, %c0_11], %11 {strides = array<i32>} : memref<1x96x1024xf32, #tpu.memory_space<vmem>>, vector<1x64x1024xf32>,
    return
  }
  func.func @transform_0(%arg0: i32, %arg1: i32) -> (i32, i32, i32) {
    %c0_i32 = arith.constant 0 : i32
    %c0_i32_0 = arith.constant 0 : i32
    return %arg1, %c0_i32, %arg0 : i32, i32, i32
  }
  func.func @transform_1(%arg0: i32, %arg1: i32) -> (i32, i32, i32) {
    %c0_i32 = arith.constant 0 : i32
    %c0_i32_0 = arith.constant 0 : i32
    %c0_i32_1 = arith.constant 0 : i32
    return %arg1, %c0_i32, %c0_i32_0 : i32, i32, i32
  }
  func.func @transform_2(%arg0: i32, %arg1: i32) -> (i32, i32) {
    %c0_i32 = arith.constant 0 : i32
    %c0_i32_0 = arith.constant 0 : i32
    return %c0_i32, %arg0 : i32, i32
  }
  func.func @transform_3(%arg0: i32, %arg1: i32) -> (i32, i32, i32) {
    %c0_i32 = arith.constant 0 : i32
    %c0_i32_0 = arith.constant 0 : i32
    return %arg1, %c0_i32, %arg0 : i32, i32, i32
  }
}

</mosaic_0001>

<bundles_post_ra>
// kernel: ppm_forward.3
= control target key start
LH: loop header
LB: loop body
LE: loop exit
PB: predicated region body
PF: predicated region fallthrough
CT: control target
= control target key end

     0   :  { %s1566_s12 = smov 0   ;;  %s1568_s13 = smov 0   ;;  %s2153_s0 = inlined_call_operand.vmem [shape: f32[2,32,1024], index: 0, kind: input, shape index: {}]   ;;  %s2154_s1 = inlined_call_operand.vmem [shape: bf16[2,64,128], index: 1, kind: input, shape index: {}]   ;;  %s2155_s2 = inlined_call_operand.vmem [shape: bf16[128,1024], index: 2, kind: input, shape index: {}]   ;;  %s2156_s3 = inlined_call_operand.vmem [shape: f32[2,96,1024], index: 3, kind: output, shape index: {}]  }
   0x1   :  { %s1570_s14 = smov 0  }
   0x2 LB: > { %s22_s15 = sadd.s32 1, %s1540_s13  ;;  %p1147_p0 = scmp.ge.s32.totalorder %s1544_s14, 1  ;;  %s1544_s14 = sphi %s1570_s14, %s13_s14   ;;  %s1540_s13 = sphi %s1568_s13, %s2158_s13   ;;  %s1536_s12 = sphi %s1566_s12, %s2157_s12  }
   0x3   : > { %p23_p1 = scmp.ge.s32.totalorder %s22_s15, 2  ;;  %p179_p2 = scmp.lt.s32.totalorder %s1544_s14, 3 }
   0x5   : > { %s2160_s15 = smov (%p23_p1, %s22_s15), 0  ;;  %p180_p3 = pnand %p1147_p0, %p179_p2 }
   0x6   : > { %p222_p4 = scmp.lt.s32.totalorder (!%p180_p3), %s1536_s12, 1 }
   0x7   : > { %183 = sbr.rel (%p180_p3) target bundleno = 302 (0x12e), region = 32 }
   0xc   : > { %v1395_v0 = vld [vmem:[%s2155_s2 + $0x1c0] sm:$0xf]  ;;  %v1489_v2 = vld [vmem:[%s2155_s2 + $0x1c4] sm:$0xf]  ;;  %v1403_v5 = vld [vmem:[%s2155_s2 + $0x1c8] sm:$0xf] }
   0xd   : > { %v1493_v1 = vld [vmem:[%s2155_s2 + $0x1dc] sm:$0xf0]  ;;  %v1397_v4 = vld [vmem:[%s2155_s2 + $0x1e0] sm:$0xf0]  ;;  %v1494_v6 = vld [vmem:[%s2155_s2 + $0x1e4] sm:$0xf0] }
   0xe   : > { %v1396_v3 = vor.u32 %v1493_v1, %v1395_v0  ;;  %v1400_v7 = vor.u32 %v1489_v2, %v1397_v4  ;;  %v1404_v8 = vor.u32 %v1494_v6, %v1403_v5  ;;  %v1490_v9 = vld [vmem:[%s2155_s2 + $0x1cc] sm:$0xf]  ;;  %v1363_v11 = vld [vmem:[%s2155_s2 + $0x180] sm:$0xf]  ;;  %v1481_v14 = vld [vmem:[%s2155_s2 + $0x184] sm:$0xf] }
   0xf   : > { %v1405_v10 = vld [vmem:[%s2155_s2 + $0x1e8] sm:$0xf0]  ;;  %v1485_v13 = vld [vmem:[%s2155_s2 + $0x19c] sm:$0xf0]  ;;  %v1365_v15 = vld [vmem:[%s2155_s2 + $0x1a0] sm:$0xf0] }
  0x10   : > { %732 = vmatpush.bf16.msra.mxu0 %v1396_v3  ;;  %v1408_v12 = vor.u32 %v1490_v9, %v1405_v10  ;;  %761 = vmatpush.bf16.msra.mxu1 %v1400_v7  ;;  %v1364_v16 = vor.u32 %v1485_v13, %v1363_v11  ;;  %v1368_v17 = vor.u32 %v1481_v14, %v1365_v15  ;;  %v1371_v18 = vld [vmem:[%s2155_s2 + $0x188] sm:$0xf]  ;;  %v1482_v20 = vld [vmem:[%s2155_s2 + $0x18c] sm:$0xf]  ;;  %v1331_v23 = vld [vmem:[%s2155_s2 + $0x140] sm:$0xf] }
  0x11   : > { %790 = vmatpush.bf16.msra.mxu2 %v1404_v8  ;;  %v1486_v19 = vld [vmem:[%s2155_s2 + $0x1a4] sm:$0xf0]  ;;  %v1373_v22 = vld [vmem:[%s2155_s2 + $0x1a8] sm:$0xf0]  ;;  %v1477_v24 = vld [vmem:[%s2155_s2 + $0x15c] sm:$0xf0] }
  0x12   : > { %819 = vmatpush.bf16.msra.mxu3 %v1408_v12  ;;  %v1372_v21 = vor.u32 %v1486_v19, %v1371_v18  ;;  %v1376_v25 = vor.u32 %v1482_v20, %v1373_v22  ;;  %v1473_v26 = vld [vmem:[%s2155_s2 + $0x144] sm:$0xf]  ;;  %v1339_v28 = vld [vmem:[%s2155_s2 + $0x148] sm:$0xf]  ;;  %v1332_v29 = vor.u32 %v1477_v24, %v1331_v23  ;;  %v1474_v31 = vld [vmem:[%s2155_s2 + $0x14c] sm:$0xf] }
  0x13   : > { %v1333_v27 = vld [vmem:[%s2155_s2 + $0x160] sm:$0xf0]  ;;  %v1478_v30 = vld [vmem:[%s2155_s2 + $0x164] sm:$0xf0]  ;;  %v1341_v32 = vld [vmem:[%s2155_s2 + $0x168] sm:$0xf0] }
  0x14   : > { %733 = vmatpush.bf16.msra.mxu0 %v1364_v16  ;;  %762 = vmatpush.bf16.msra.mxu1 %v1368_v17  ;;  %v1336_v33 = vor.u32 %v1473_v26, %v1333_v27  ;;  %v1340_v34 = vor.u32 %v1478_v30, %v1339_v28  ;;  %v1299_v35 = vld [vmem:[%s2155_s2 + $0x100] sm:$0xf]  ;;  %v1465_v37 = vld [vmem:[%s2155_s2 + $0x104] sm:$0xf]  ;;  %v1344_v38 = vor.u32 %v1474_v31, %v1341_v32  ;;  %v1307_v40 = vld [vmem:[%s2155_s2 + $0x108] sm:$0xf] }
  0x15   : > { %791 = vmatpush.bf16.msra.mxu2 %v1372_v21  ;;  %v1469_v36 = vld [vmem:[%s2155_s2 + $0x11c] sm:$0xf0]  ;;  %v1301_v39 = vld [vmem:[%s2155_s2 + $0x120] sm:$0xf0]  ;;  %v1470_v41 = vld [vmem:[%s2155_s2 + $0x124] sm:$0xf0] }
  0x16   : > { %820 = vmatpush.bf16.msra.mxu3 %v1376_v25  ;;  %v1466_v42 = vld [vmem:[%s2155_s2 + $0x10c] sm:$0xf]  ;;  %v1300_v44 = vor.u32 %v1469_v36, %v1299_v35  ;;  %v1304_v45 = vor.u32 %v1465_v37, %v1301_v39  ;;  %v1308_v46 = vor.u32 %v1470_v41, %v1307_v40  ;;  %v1267_v47 = vld [vmem:[%s2155_s2 + $0xc0] sm:$0xf]  ;;  %v1457_v49 = vld [vmem:[%s2155_s2 + $0xc4] sm:$0xf] }
  0x17   : > { %v1309_v43 = vld [vmem:[%s2155_s2 + $0x128] sm:$0xf0]  ;;  %v1461_v48 = vld [vmem:[%s2155_s2 + $0xdc] sm:$0xf0]  ;;  %v1269_v51 = vld [vmem:[%s2155_s2 + $0xe0] sm:$0xf0] }
  0x18   : > { %734 = vmatpush.bf16.msra.mxu0 %v1332_v29  ;;  %763 = vmatpush.bf16.msra.mxu1 %v1336_v33  ;;  %v1312_v50 = vor.u32 %v1466_v42, %v1309_v43  ;;  %v1275_v52 = vld [vmem:[%s2155_s2 + $0xc8] sm:$0xf]  ;;  %v1458_v54 = vld [vmem:[%s2155_s2 + $0xcc] sm:$0xf]  ;;  %v1268_v56 = vor.u32 %v1461_v48, %v1267_v47  ;;  %v1272_v57 = vor.u32 %v1457_v49, %v1269_v51  ;;  %v1235_v59 = vld [vmem:[%s2155_s2 + $0x80] sm:$0xf] }
  0x19   : > { %792 = vmatpush.bf16.msra.mxu2 %v1340_v34  ;;  %v1462_v53 = vld [vmem:[%s2155_s2 + $0xe4] sm:$0xf0]  ;;  %v1277_v55 = vld [vmem:[%s2155_s2 + $0xe8] sm:$0xf0]  ;;  %v1453_v60 = vld [vmem:[%s2155_s2 + $0x9c] sm:$0xf0] }
  0x1a   : > { %821 = vmatpush.bf16.msra.mxu3 %v1344_v38  ;;  %v1276_v58 = vor.u32 %v1462_v53, %v1275_v52  ;;  %v1449_v61 = vld [vmem:[%s2155_s2 + $0x84] sm:$0xf]  ;;  %v1280_v62 = vor.u32 %v1458_v54, %v1277_v55  ;;  %v1243_v0 = vld [vmem:[%s2155_s2 + $0x88] sm:$0xf]  ;;  %v1450_v2 = vld [vmem:[%s2155_s2 + $0x8c] sm:$0xf]  ;;  %v1236_v4 = vor.u32 %v1453_v60, %v1235_v59 }
  0x1b   : > { %v1237_v63 = vld [vmem:[%s2155_s2 + $0xa0] sm:$0xf0]  ;;  %v1454_v1 = vld [vmem:[%s2155_s2 + $0xa4] sm:$0xf0]  ;;  %v1245_v3 = vld [vmem:[%s2155_s2 + $0xa8] sm:$0xf0] }
  0x1c   : > { %735 = vmatpush.bf16.msra.mxu0 %v1300_v44  ;;  %764 = vmatpush.bf16.msra.mxu1 %v1304_v45  ;;  %v1203_v5 = vld [vmem:[%s2155_s2 + $0x40] sm:$0xf]  ;;  %v1240_v6 = vor.u32 %v1449_v61, %v1237_v63  ;;  %v1244_v7 = vor.u32 %v1454_v1, %v1243_v0  ;;  %v1441_v9 = vld [vmem:[%s2155_s2 + $0x44] sm:$0xf]  ;;  %v1248_v11 = vor.u32 %v1450_v2, %v1245_v3  ;;  %v1211_v12 = vld [vmem:[%s2155_s2 + $0x48] sm:$0xf] }
  0x1d   : > { %793 = vmatpush.bf16.msra.mxu2 %v1308_v46  ;;  %v1445_v8 = vld [vmem:[%s2155_s2 + $0x5c] sm:$0xf0]  ;;  %v1205_v10 = vld [vmem:[%s2155_s2 + $0x60] sm:$0xf0]  ;;  %v1446_v13 = vld [vmem:[%s2155_s2 + $0x64] sm:$0xf0] }
  0x1e   : > { %822 = vmatpush.bf16.msra.mxu3 %v1312_v50  ;;  %v1442_v14 = vld [vmem:[%s2155_s2 + $0x4c] sm:$0xf]  ;;  %v1204_v16 = vor.u32 %v1445_v8, %v1203_v5  ;;  %v1171_v17 = vld [vmem:[%s2155_s2] sm:$0xf]  ;;  %s2162_s12 = smov (!%p222_p4, %s1536_s12), 1  ;;  %v1208_v18 = vor.u32 %v1441_v9, %v1205_v10  ;;  %v1212_v19 = vor.u32 %v1446_v13, %v1211_v12 }
  0x1f   : > { %v1213_v15 = vld [vmem:[%s2155_s2 + $0x68] sm:$0xf0]  ;;  %v1437_v20 = vld [vmem:[%s2155_s2 + $0x1c] sm:$0xf0]  ;;  %v1433_v21 = vld [vmem:[%s2155_s2 + $0x4] sm:$0xf] }
  0x20   : > { %736 = vmatpush.bf16.msra.mxu0 %v1268_v56  ;;  %765 = vmatpush.bf16.msra.mxu1 %v1272_v57  ;;  %v1173_v22 = vld [vmem:[%s2155_s2 + $0x20] sm:$0xf0]  ;;  %v1216_v23 = vor.u32 %v1442_v14, %v1213_v15  ;;  %v1179_v24 = vld [vmem:[%s2155_s2 + $0x8] sm:$0xf]  ;;  %s1427_s25 = sshll.u32 %s2162_s12, 8  ;;  %v1172_v28 = vor.u32 %v1437_v20, %v1171_v17  ;;  %s1497_s6 = smul.u32 768, %s2162_s12 }
  0x21   : > { %794 = vmatpush.bf16.msra.mxu2 %v1276_v58  ;;  %v1438_v25 = vld [vmem:[%s2155_s2 + $0x24] sm:$0xf0]  ;;  %v1434_v26 = vld [vmem:[%s2155_s2 + $0xc] sm:$0xf]  ;;  %s1786_s5 = scalar_lea.vmem %s2153_s0, %s1427_s25  ;;  %v1176_v30 = vor.u32 %v1433_v21, %v1173_v22  ;;  %s1428_s10 = sshll.u32 %s2162_s12, 5 }
  0x22   : > { %823 = vmatpush.bf16.msra.mxu3 %v1280_v62  ;;  %v1181_v27 = vld [vmem:[%s2155_s2 + $0x28] sm:$0xf0]  ;;  %v252_v29 = vld [vmem:[%s1786_s5] sm:$0xff]  ;;  %v1180_v31 = vor.u32 %v1438_v25, %v1179_v24  ;;  %s1794_s9 = scalar_lea.vmem %s2156_s3, %s1497_s6  ;;  %v254_v34 = vld [vmem:[%s1786_s5 + $0x10] sm:$0xff]  ;;  %s1809_s12 = scalar_lea.vmem %s2154_s1, %s1428_s10 }
  0x23   : > { %v253_v32 = vld [vmem:[%s1786_s5 + $0x8] sm:$0xff]  ;;  %v1184_v33 = vor.u32 %v1434_v26, %v1181_v27  ;;  %v255_v35 = vld [vmem:[%s1786_s5 + $0x18] sm:$0xff]  ;;  %284 = vst [vmem:[%s1794_s9] sm:$0xff] %v252_v29  ;;  %v256_v36 = vld [vmem:[%s1786_s5 + $0x20] sm:$0xff] }
  0x24   : > { %737 = vmatpush.bf16.msra.mxu0 %v1236_v4  ;;  %766 = vmatpush.bf16.msra.mxu1 %v1240_v6  ;;  %285 = vst [vmem:[%s1794_s9 + $0x8] sm:$0xff] %v253_v32  ;;  %v257_v37 = vld [vmem:[%s1786_s5 + $0x28] sm:$0xff]  ;;  %v258_v38 = vld [vmem:[%s1786_s5 + $0x30] sm:$0xff]  ;;  %v259_v39 = vld [vmem:[%s1786_s5 + $0x38] sm:$0xff] }
  0x25   : > { %795 = vmatpush.bf16.msra.mxu2 %v1244_v7  ;;  %286 = vst [vmem:[%s1794_s9 + $0x10] sm:$0xff] %v254_v34  ;;  %v260_v40 = vld [vmem:[%s1786_s5 + $0x40] sm:$0xff]  ;;  %v261_v41 = vld [vmem:[%s1786_s5 + $0x48] sm:$0xff]  ;;  %v262_v42 = vld [vmem:[%s1786_s5 + $0x50] sm:$0xff] }
  0x26   : > { %824 = vmatpush.bf16.msra.mxu3 %v1248_v11  ;;  %287 = vst [vmem:[%s1794_s9 + $0x18] sm:$0xff] %v255_v35  ;;  %v263_v43 = vld [vmem:[%s1786_s5 + $0x58] sm:$0xff]  ;;  %v1821_v44 = vld [vmem:[%s1809_s12] sm:$0xff]  ;;  %v265_v48 = vld [vmem:[%s1786_s5 + $0x68] sm:$0xff] }
  0x27   : > { %288 = vst [vmem:[%s1794_s9 + $0x20] sm:$0xff] %v256_v36  ;;  %v264_v45 = vld [vmem:[%s1786_s5 + $0x60] sm:$0xff]  ;;  %v1419_v46 = vld [vmem:[%s2155_s2 + $0x1d8] sm:$0xf]  ;;  %v1492_v50 = vld [vmem:[%s2155_s2 + $0x1dc] sm:$0xf] }
  0x28   : > { %738 = vmatpush.bf16.msra.mxu0 %v1204_v16  ;;  %767 = vmatpush.bf16.msra.mxu1 %v1208_v18  ;;  %289 = vst [vmem:[%s1794_s9 + $0x28] sm:$0xff] %v257_v37  ;;  %v1496_v47 = vld [vmem:[%s2155_s2 + $0x1f4] sm:$0xf0]  ;;  %v1421_v51 = vld [vmem:[%s2155_s2 + $0x1f8] sm:$0xf0]  ;;  %v266_v52 = vld [vmem:[%s1786_s5 + $0x70] sm:$0xff] }
  0x29   : > { %796 = vmatpush.bf16.msra.mxu2 %v1212_v19  ;;  %290 = vst [vmem:[%s1794_s9 + $0x30] sm:$0xff] %v258_v38  ;;  %v1420_v49 = vor.u32 %v1496_v47, %v1419_v46  ;;  %v1424_v53 = vor.u32 %v1492_v50, %v1421_v51  ;;  %v1411_v54 = vld [vmem:[%s2155_s2 + $0x1d0] sm:$0xf]  ;;  %v267_v56 = vld [vmem:[%s1786_s5 + $0x78] sm:$0xff]  ;;  %v1491_v58 = vld [vmem:[%s2155_s2 + $0x1d4] sm:$0xf] }
  0x2a   : > { %825 = vmatpush.bf16.msra.mxu3 %v1216_v23  ;;  %291 = vst [vmem:[%s1794_s9 + $0x38] sm:$0xff] %v259_v39  ;;  %v1495_v55 = vld [vmem:[%s2155_s2 + $0x1ec] sm:$0xf0]  ;;  %v1413_v59 = vld [vmem:[%s2155_s2 + $0x1f0] sm:$0xf0]  ;;  %v268_v60 = vld [vmem:[%s1786_s5 + $0x80] sm:$0xff] }
  0x2b   : > { %292 = vst [vmem:[%s1794_s9 + $0x40] sm:$0xff] %v260_v40  ;;  %v1412_v57 = vor.u32 %v1495_v55, %v1411_v54  ;;  %v1416_v61 = vor.u32 %v1491_v58, %v1413_v59  ;;  %v1387_v62 = vld [vmem:[%s2155_s2 + $0x198] sm:$0xf]  ;;  %v269_v0 = vld [vmem:[%s1786_s5 + $0x88] sm:$0xff]  ;;  %v1484_v2 = vld [vmem:[%s2155_s2 + $0x19c] sm:$0xf] }
  0x2c   : > { %739 = vmatpush.bf16.msra.mxu0 %v1172_v28  ;;  %768 = vmatpush.bf16.msra.mxu1 %v1176_v30  ;;  %293 = vst [vmem:[%s1794_s9 + $0x48] sm:$0xff] %v261_v41  ;;  %v1488_v63 = vld [vmem:[%s2155_s2 + $0x1b4] sm:$0xf0]  ;;  %v1389_v3 = vld [vmem:[%s2155_s2 + $0x1b8] sm:$0xf0]  ;;  %v270_v4 = vld [vmem:[%s1786_s5 + $0x90] sm:$0xff] }
  0x2d   : > { %797 = vmatpush.bf16.msra.mxu2 %v1180_v31  ;;  %294 = vst [vmem:[%s1794_s9 + $0x50] sm:$0xff] %v262_v42  ;;  %v1388_v1 = vor.u32 %v1488_v63, %v1387_v62  ;;  %v1392_v5 = vor.u32 %v1484_v2, %v1389_v3  ;;  %v1379_v6 = vld [vmem:[%s2155_s2 + $0x190] sm:$0xf]  ;;  %v271_v8 = vld [vmem:[%s1786_s5 + $0x98] sm:$0xff]  ;;  %v1483_v10 = vld [vmem:[%s2155_s2 + $0x194] sm:$0xf] }
  0x2e   : > { %826 = vmatpush.bf16.msra.mxu3 %v1184_v33  ;;  %295 = vst [vmem:[%s1794_s9 + $0x58] sm:$0xff] %v263_v43  ;;  %v1487_v7 = vld [vmem:[%s2155_s2 + $0x1ac] sm:$0xf0]  ;;  %v1381_v11 = vld [vmem:[%s2155_s2 + $0x1b0] sm:$0xf0]  ;;  %v272_v12 = vld [vmem:[%s1786_s5 + $0xa0] sm:$0xff] }
  0x2f   : > { %740 = vmatmul.bf16.vlgmr.msra.gmra.mxu0 %v1821_v44  ;;  %769 = vmatmul.bf16.vlgmr.msra.gmra.mxu1 %v1821_v44  ;;  %296 = vst [vmem:[%s1794_s9 + $0x60] sm:$0xff] %v264_v45  ;;  %v1380_v9 = vor.u32 %v1487_v7, %v1379_v6  ;;  %v1384_v13 = vor.u32 %v1483_v10, %v1381_v11  ;;  %v1355_v14 = vld [vmem:[%s2155_s2 + $0x158] sm:$0xf]  ;;  %v273_v16 = vld [vmem:[%s1786_s5 + $0xa8] sm:$0xff]  ;;  %v1476_v18 = vld [vmem:[%s2155_s2 + $0x15c] sm:$0xf] }
  0x30   : > { %798 = vmatmul.bf16.vlgmr.msra.gmra.mxu2 %v1821_v44  ;;  %297 = vst [vmem:[%s1794_s9 + $0x68] sm:$0xff] %v265_v48  ;;  %848 = vmatpush.bf16.msrb.mxu0 %v1412_v57  ;;  %v1480_v15 = vld [vmem:[%s2155_s2 + $0x174] sm:$0xf0]  ;;  %v1357_v19 = vld [vmem:[%s2155_s2 + $0x178] sm:$0xf0]  ;;  %v274_v20 = vld [vmem:[%s1786_s5 + $0xb0] sm:$0xff] }
  0x31   : > { %827 = vmatmul.bf16.vlgmr.msra.gmra.mxu3 %v1821_v44  ;;  %906 = vmatpush.bf16.msrb.mxu2 %v1420_v49  ;;  %298 = vst [vmem:[%s1794_s9 + $0x70] sm:$0xff] %v266_v52  ;;  %v1356_v17 = vor.u32 %v1480_v15, %v1355_v14  ;;  %v1360_v21 = vor.u32 %v1476_v18, %v1357_v19  ;;  %v1347_v22 = vld [vmem:[%s2155_s2 + $0x150] sm:$0xf]  ;;  %v275_v24 = vld [vmem:[%s1786_s5 + $0xb8] sm:$0xff]  ;;  %v1475_v26 = vld [vmem:[%s2155_s2 + $0x154] sm:$0xf] }
  0x32   : > { %935 = vmatpush.bf16.msrb.mxu3 %v1424_v53  ;;  %877 = vmatpush.bf16.msrb.mxu1 %v1416_v61  ;;  %299 = vst [vmem:[%s1794_s9 + $0x78] sm:$0xff] %v267_v56  ;;  %v1479_v23 = vld [vmem:[%s2155_s2 + $0x16c] sm:$0xf0]  ;;  %v1349_v27 = vld [vmem:[%s2155_s2 + $0x170] sm:$0xf0]  ;;  %v276_v28 = vld [vmem:[%s1786_s5 + $0xc0] sm:$0xff] }
  0x33   : > { %300 = vst [vmem:[%s1794_s9 + $0x80] sm:$0xff] %v268_v60  ;;  %v1348_v25 = vor.u32 %v1479_v23, %v1347_v22  ;;  %v1352_v29 = vor.u32 %v1475_v26, %v1349_v27  ;;  %v1323_v30 = vld [vmem:[%s2155_s2 + $0x118] sm:$0xf]  ;;  %v1933_v32 = vld [vmem:[%s1809_s12 + $0x8] sm:$0xff]  ;;  %v1468_v34 = vld [vmem:[%s2155_s2 + $0x11c] sm:$0xf] }
  0x34   : > { %301 = vst [vmem:[%s1794_s9 + $0x88] sm:$0xff] %v269_v0  ;;  %849 = vmatpush.bf16.msrb.mxu0 %v1380_v9  ;;  %v1472_v31 = vld [vmem:[%s2155_s2 + $0x134] sm:$0xf0]  ;;  %v1325_v35 = vld [vmem:[%s2155_s2 + $0x138] sm:$0xf0]  ;;  %v277_v36 = vld [vmem:[%s1786_s5 + $0xc8] sm:$0xff] }
  0x35   : > { %907 = vmatpush.bf16.msrb.mxu2 %v1388_v1  ;;  %302 = vst [vmem:[%s1794_s9 + $0x90] sm:$0xff] %v270_v4  ;;  %v1324_v33 = vor.u32 %v1472_v31, %v1323_v30  ;;  %v1328_v37 = vor.u32 %v1468_v34, %v1325_v35  ;;  %v1315_v38 = vld [vmem:[%s2155_s2 + $0x110] sm:$0xf]  ;;  %v1467_v42 = vld [vmem:[%s2155_s2 + $0x114] sm:$0xf]  ;;  %v279_v45 = vld [vmem:[%s1786_s5 + $0xd8] sm:$0xff] }
  0x36   : > { %936 = vmatpush.bf16.msrb.mxu3 %v1392_v5  ;;  %878 = vmatpush.bf16.msrb.mxu1 %v1384_v13  ;;  %303 = vst [vmem:[%s1794_s9 + $0x98] sm:$0xff] %v271_v8  ;;  %v1471_v39 = vld [vmem:[%s2155_s2 + $0x12c] sm:$0xf0]  ;;  %v1317_v43 = vld [vmem:[%s2155_s2 + $0x130] sm:$0xf0]  ;;  %v280_v49 = vld [vmem:[%s1786_s5 + $0xe0] sm:$0xff] }
  0x37   : > { %304 = vst [vmem:[%s1794_s9 + $0xa0] sm:$0xff] %v272_v12  ;;  %v278_v40 = vld [vmem:[%s1786_s5 + $0xd0] sm:$0xff]  ;;  %v1316_v41 = vor.u32 %v1471_v39, %v1315_v38  ;;  %v1320_v46 = vor.u32 %v1467_v42, %v1317_v43  ;;  %v1291_v47 = vld [vmem:[%s2155_s2 + $0xd8] sm:$0xf]  ;;  %v1460_v51 = vld [vmem:[%s2155_s2 + $0xdc] sm:$0xf] }
  0x38   : > { %305 = vst [vmem:[%s1794_s9 + $0xa8] sm:$0xff] %v273_v16  ;;  %850 = vmatpush.bf16.msrb.mxu0 %v1348_v25  ;;  %v1464_v48 = vld [vmem:[%s2155_s2 + $0xf4] sm:$0xf0]  ;;  %v1293_v52 = vld [vmem:[%s2155_s2 + $0xf8] sm:$0xf0]  ;;  %v281_v53 = vld [vmem:[%s1786_s5 + $0xe8] sm:$0xff] }
  0x39   : > { %908 = vmatpush.bf16.msrb.mxu2 %v1356_v17  ;;  %306 = vst [vmem:[%s1794_s9 + $0xb0] sm:$0xff] %v274_v20  ;;  %v1292_v50 = vor.u32 %v1464_v48, %v1291_v47  ;;  %v1296_v54 = vor.u32 %v1460_v51, %v1293_v52  ;;  %v1283_v55 = vld [vmem:[%s2155_s2 + $0xd0] sm:$0xf]  ;;  %v1459_v59 = vld [vmem:[%s2155_s2 + $0xd4] sm:$0xf]  ;;  %v283_v61 = vld [vmem:[%s1786_s5 + $0xf8] sm:$0xff] }
  0x3a   : > { %937 = vmatpush.bf16.msrb.mxu3 %v1360_v21  ;;  %879 = vmatpush.bf16.msrb.mxu1 %v1352_v29  ;;  %307 = vst [vmem:[%s1794_s9 + $0xb8] sm:$0xff] %v275_v24  ;;  %v1463_v56 = vld [vmem:[%s2155_s2 + $0xec] sm:$0xf0]  ;;  %v1285_v60 = vld [vmem:[%s2155_s2 + $0xf0] sm:$0xf0] }
  0x3b   : > { %308 = vst [vmem:[%s1794_s9 + $0xc0] sm:$0xff] %v276_v28  ;;  %v282_v57 = vld [vmem:[%s1786_s5 + $0xf0] sm:$0xff]  ;;  %v1284_v58 = vor.u32 %v1463_v56, %v1283_v55  ;;  %v1288_v62 = vor.u32 %v1459_v59, %v1285_v60  ;;  %v1259_v63 = vld [vmem:[%s2155_s2 + $0x98] sm:$0xf]  ;;  %v1452_v2 = vld [vmem:[%s2155_s2 + $0x9c] sm:$0xf] }
  0x3c   : > { %309 = vst [vmem:[%s1794_s9 + $0xc8] sm:$0xff] %v277_v36  ;;  %851 = vmatpush.bf16.msrb.mxu0 %v1316_v41  ;;  %v1456_v0 = vld [vmem:[%s2155_s2 + $0xb4] sm:$0xf0]  ;;  %v1261_v3 = vld [vmem:[%s2155_s2 + $0xb8] sm:$0xf0] }
  0x3d   : > { %909 = vmatpush.bf16.msrb.mxu2 %v1324_v33  ;;  %310 = vst [vmem:[%s1794_s9 + $0xd0] sm:$0xff] %v278_v40  ;;  %v1260_v1 = vor.u32 %v1456_v0, %v1259_v63  ;;  %v1264_v4 = vor.u32 %v1452_v2, %v1261_v3  ;;  %v1251_v5 = vld [vmem:[%s2155_s2 + $0x90] sm:$0xf]  ;;  %v1451_v8 = vld [vmem:[%s2155_s2 + $0x94] sm:$0xf] }
  0x3e   : > { %938 = vmatpush.bf16.msrb.mxu3 %v1328_v37  ;;  %311 = vst [vmem:[%s1794_s9 + $0xd8] sm:$0xff] %v279_v45  ;;  %880 = vmatpush.bf16.msrb.mxu1 %v1320_v46  ;;  %v1455_v6 = vld [vmem:[%s2155_s2 + $0xac] sm:$0xf0]  ;;  %v1253_v9 = vld [vmem:[%s2155_s2 + $0xb0] sm:$0xf0]  ;;  %v1432_v37 = vld [vmem:[%s1809_s12 + $0x18] sm:$0xff] }
  0x3f   : > { %745 = vmatmul.bf16.gmra.mxu0 %v1933_v32  ;;  %774 = vmatmul.bf16.gmra.mxu1 %v1933_v32  ;;  %312 = vst [vmem:[%s1794_s9 + $0xe0] sm:$0xff] %v280_v49  ;;  %v1252_v7 = vor.u32 %v1455_v6, %v1251_v5  ;;  %v1256_v10 = vor.u32 %v1451_v8, %v1253_v9  ;;  %v1227_v11 = vld [vmem:[%s2155_s2 + $0x58] sm:$0xf]  ;;  %v1444_v13 = vld [vmem:[%s2155_s2 + $0x5c] sm:$0xf]  ;;  %v1431_v33 = vld [vmem:[%s1809_s12 + $0x10] sm:$0xff] }
  0x40   : > { %803 = vmatmul.bf16.gmra.mxu2 %v1933_v32  ;;  %313 = vst [vmem:[%s1794_s9 + $0xe8] sm:$0xff] %v281_v53  ;;  %852 = vmatpush.bf16.msrb.mxu0 %v1284_v58  ;;  %v1448_v12 = vld [vmem:[%s2155_s2 + $0x74] sm:$0xf0]  ;;  %v1229_v15 = vld [vmem:[%s2155_s2 + $0x78] sm:$0xf0] }
  0x41   : > { %832 = vmatmul.bf16.gmra.mxu3 %v1933_v32  ;;  %910 = vmatpush.bf16.msrb.mxu2 %v1292_v50  ;;  %314 = vst [vmem:[%s1794_s9 + $0xf0] sm:$0xff] %v282_v57  ;;  %v1228_v14 = vor.u32 %v1448_v12, %v1227_v11  ;;  %v1219_v16 = vld [vmem:[%s2155_s2 + $0x50] sm:$0xf]  ;;  %v1232_v18 = vor.u32 %v1444_v13, %v1229_v15  ;;  %v1443_v19 = vld [vmem:[%s2155_s2 + $0x54] sm:$0xf] }
  0x42   : > { %939 = vmatpush.bf16.msrb.mxu3 %v1296_v54  ;;  %315 = vst [vmem:[%s1794_s9 + $0xf8] sm:$0xff] %v283_v61  ;;  %881 = vmatpush.bf16.msrb.mxu1 %v1288_v62  ;;  %v1447_v17 = vld [vmem:[%s2155_s2 + $0x6c] sm:$0xf0]  ;;  %v1221_v20 = vld [vmem:[%s2155_s2 + $0x70] sm:$0xf0] }
  0x43   : > { %v1195_v21 = vld [vmem:[%s2155_s2 + $0x18] sm:$0xf]  ;;  %v1220_v22 = vor.u32 %v1447_v17, %v1219_v16  ;;  %v1224_v23 = vor.u32 %v1443_v19, %v1221_v20  ;;  %v1436_v25 = vld [vmem:[%s2155_s2 + $0x1c] sm:$0xf]  ;;  %v1187_v29 = vld [vmem:[%s2155_s2 + $0x10] sm:$0xf] }
  0x44   : > { %853 = vmatpush.bf16.msrb.mxu0 %v1252_v7  ;;  %v1440_v24 = vld [vmem:[%s2155_s2 + $0x34] sm:$0xf0]  ;;  %v1197_v26 = vld [vmem:[%s2155_s2 + $0x38] sm:$0xf0]  ;;  %v1439_v30 = vld [vmem:[%s2155_s2 + $0x2c] sm:$0xf0] }
  0x45   : > { %911 = vmatpush.bf16.msrb.mxu2 %v1260_v1  ;;  %v1196_v27 = vor.u32 %v1440_v24, %v1195_v21  ;;  %v1200_v28 = vor.u32 %v1436_v25, %v1197_v26  ;;  %v1435_v31 = vld [vmem:[%s2155_s2 + $0x14] sm:$0xf]  ;;  %v1188_v35 = vor.u32 %v1439_v30, %v1187_v29 }
  0x46   : > { %940 = vmatpush.bf16.msrb.mxu3 %v1264_v4  ;;  %882 = vmatpush.bf16.msrb.mxu1 %v1256_v10  ;;  %v1189_v34 = vld [vmem:[%s2155_s2 + $0x30] sm:$0xf0] }
  0x47   : > { %v1192_v36 = vor.u32 %v1435_v31, %v1189_v34 }
  0x48   : > { %854 = vmatpush.bf16.msrb.mxu0 %v1220_v22 }
  0x49   : > { %912 = vmatpush.bf16.msrb.mxu2 %v1228_v14 }
  0x4a   : > { %941 = vmatpush.bf16.msrb.mxu3 %v1232_v18  ;;  %883 = vmatpush.bf16.msrb.mxu1 %v1224_v23 }
  0x4c   : > { %855 = vmatpush.bf16.msrb.mxu0 %v1188_v35 }
  0x4d   : > { %913 = vmatpush.bf16.msrb.mxu2 %v1196_v27 }
  0x4e   : > { %942 = vmatpush.bf16.msrb.mxu3 %v1200_v28  ;;  %884 = vmatpush.bf16.msrb.mxu1 %v1192_v36 }
  0x4f   : > { %750 = vmatmul.bf16.gmra.mxu0 %v1431_v33  ;;  %779 = vmatmul.bf16.gmra.mxu1 %v1431_v33 }
  0x50   : > { %808 = vmatmul.bf16.gmra.mxu2 %v1431_v33 }
  0x51   : > { %837 = vmatmul.bf16.gmra.mxu3 %v1431_v33 }
  0x5f   : > { %755 = vmatmul.bf16.gmra.mxu0 %v1432_v37  ;;  %784 = vmatmul.bf16.gmra.mxu1 %v1432_v37 }
  0x60   : > { %813 = vmatmul.bf16.gmra.mxu2 %v1432_v37 }
  0x61   : > { %842 = vmatmul.bf16.gmra.mxu3 %v1432_v37 }
  0x6f   : > { %856 = vmatmul.bf16.vlgmr.msrb.gmra.mxu0 %v1821_v44  ;;  %885 = vmatmul.bf16.vlgmr.msrb.gmra.mxu1 %v1821_v44 }
  0x70   : > { %914 = vmatmul.bf16.vlgmr.msrb.gmra.mxu2 %v1821_v44 }
  0x71   : > { %943 = vmatmul.bf16.vlgmr.msrb.gmra.mxu3 %v1821_v44 }
  0x7f   : > { %861 = vmatmul.bf16.gmra.mxu0 %v1933_v32  ;;  %890 = vmatmul.bf16.gmra.mxu1 %v1933_v32 }
  0x80   : > { %919 = vmatmul.bf16.gmra.mxu2 %v1933_v32 }
  0x81   : > { %948 = vmatmul.bf16.gmra.mxu3 %v1933_v32 }
  0x8f   : > { %866 = vmatmul.bf16.gmra.mxu0 %v1431_v33  ;;  %895 = vmatmul.bf16.gmra.mxu1 %v1431_v33 }
  0x90   : > { %924 = vmatmul.bf16.gmra.mxu2 %v1431_v33 }
  0x91   : > { %953 = vmatmul.bf16.gmra.mxu3 %v1431_v33 }
  0x9f   : > { %871 = vmatmul.bf16.gmra.mxu0 %v1432_v37  ;;  %900 = vmatmul.bf16.gmra.mxu1 %v1432_v37 }
  0xa0   : > { %929 = vmatmul.bf16.gmra.mxu2 %v1432_v37 }
  0xa1   : > { %958 = vmatmul.bf16.gmra.mxu3 %v1432_v37 }
  0xac   : > { %v741_v44 = vpop.f32.mrf.mxu0  ;;  %v770_v38 = vpop.f32.mrf.mxu1 }
  0xad   : > { %964 = vst [vmem:[%s1794_s9 + $0x100] sm:$0xff] %v741_v44 }
  0xae   : > { %965 = vst [vmem:[%s1794_s9 + $0x108] sm:$0xff] %v770_v38 }
  0xb3   : > { %v799_v32 = vpop.f32.mrf.mxu2 }
  0xb4   : > { %v828_v39 = vpop.f32.mrf.mxu3  ;;  %966 = vst [vmem:[%s1794_s9 + $0x110] sm:$0xff] %v799_v32  ;;  %v743_v40 = vpop.f32.mrf.mxu0 }
  0xb5   : > { %v772_v41 = vpop.f32.mrf.mxu1  ;;  %967 = vst [vmem:[%s1794_s9 + $0x118] sm:$0xff] %v828_v39 }
  0xb6   : > { %972 = vst [vmem:[%s1794_s9 + $0x140] sm:$0xff] %v743_v40 }
  0xb7   : > { %973 = vst [vmem:[%s1794_s9 + $0x148] sm:$0xff] %v772_v41 }
  0xbb   : > { %v801_v42 = vpop.f32.mrf.mxu2 }
  0xbc   : > { %v830_v43 = vpop.f32.mrf.mxu3  ;;  %974 = vst [vmem:[%s1794_s9 + $0x150] sm:$0xff] %v801_v42  ;;  %v746_v45 = vpop.f32.mrf.mxu0 }
  0xbd   : > { %v775_v46 = vpop.f32.mrf.mxu1  ;;  %975 = vst [vmem:[%s1794_s9 + $0x158] sm:$0xff] %v830_v43 }
  0xbe   : > { %980 = vst [vmem:[%s1794_s9 + $0x180] sm:$0xff] %v746_v45 }
  0xbf   : > { %981 = vst [vmem:[%s1794_s9 + $0x188] sm:$0xff] %v775_v46 }
  0xc3   : > { %v804_v47 = vpop.f32.mrf.mxu2 }
  0xc4   : > { %v833_v48 = vpop.f32.mrf.mxu3  ;;  %982 = vst [vmem:[%s1794_s9 + $0x190] sm:$0xff] %v804_v47  ;;  %v748_v49 = vpop.f32.mrf.mxu0 }
  0xc5   : > { %v777_v50 = vpop.f32.mrf.mxu1  ;;  %983 = vst [vmem:[%s1794_s9 + $0x198] sm:$0xff] %v833_v48 }
  0xc6   : > { %988 = vst [vmem:[%s1794_s9 + $0x1c0] sm:$0xff] %v748_v49 }
  0xc7   : > { %989 = vst [vmem:[%s1794_s9 + $0x1c8] sm:$0xff] %v777_v50 }
  0xcb   : > { %v806_v51 = vpop.f32.mrf.mxu2 }
  0xcc   : > { %v835_v52 = vpop.f32.mrf.mxu3  ;;  %990 = vst [vmem:[%s1794_s9 + $0x1d0] sm:$0xff] %v806_v51  ;;  %v751_v53 = vpop.f32.mrf.mxu0 }
  0xcd   : > { %v780_v54 = vpop.f32.mrf.mxu1  ;;  %991 = vst [vmem:[%s1794_s9 + $0x1d8] sm:$0xff] %v835_v52 }
  0xce   : > { %996 = vst [vmem:[%s1794_s9 + $0x200] sm:$0xff] %v751_v53 }
  0xcf   : > { %997 = vst [vmem:[%s1794_s9 + $0x208] sm:$0xff] %v780_v54 }
  0xd3   : > { %v809_v55 = vpop.f32.mrf.mxu2 }
  0xd4   : > { %v838_v56 = vpop.f32.mrf.mxu3  ;;  %998 = vst [vmem:[%s1794_s9 + $0x210] sm:$0xff] %v809_v55  ;;  %v753_v57 = vpop.f32.mrf.mxu0 }
  0xd5   : > { %v782_v58 = vpop.f32.mrf.mxu1  ;;  %999 = vst [vmem:[%s1794_s9 + $0x218] sm:$0xff] %v838_v56 }
  0xd6   : > { %1004 = vst [vmem:[%s1794_s9 + $0x240] sm:$0xff] %v753_v57 }
  0xd7   : > { %1005 = vst [vmem:[%s1794_s9 + $0x248] sm:$0xff] %v782_v58 }
  0xdb   : > { %v811_v59 = vpop.f32.mrf.mxu2 }
  0xdc   : > { %v840_v60 = vpop.f32.mrf.mxu3  ;;  %1006 = vst [vmem:[%s1794_s9 + $0x250] sm:$0xff] %v811_v59  ;;  %v756_v61 = vpop.f32.mrf.mxu0 }
  0xdd   : > { %v785_v62 = vpop.f32.mrf.mxu1  ;;  %1007 = vst [vmem:[%s1794_s9 + $0x258] sm:$0xff] %v840_v60 }
  0xde   : > { %1012 = vst [vmem:[%s1794_s9 + $0x280] sm:$0xff] %v756_v61 }
  0xdf   : > { %1013 = vst [vmem:[%s1794_s9 + $0x288] sm:$0xff] %v785_v62 }
  0xe3   : > { %v814_v63 = vpop.f32.mrf.mxu2 }
  0xe4   : > { %v843_v0 = vpop.f32.mrf.mxu3  ;;  %1014 = vst [vmem:[%s1794_s9 + $0x290] sm:$0xff] %v814_v63  ;;  %v758_v1 = vpop.f32.mrf.mxu0 }
  0xe5   : > { %v787_v2 = vpop.f32.mrf.mxu1  ;;  %1015 = vst [vmem:[%s1794_s9 + $0x298] sm:$0xff] %v843_v0 }
  0xe6   : > { %1020 = vst [vmem:[%s1794_s9 + $0x2c0] sm:$0xff] %v758_v1 }
  0xe7   : > { %1021 = vst [vmem:[%s1794_s9 + $0x2c8] sm:$0xff] %v787_v2 }
  0xeb   : > { %v816_v3 = vpop.f32.mrf.mxu2 }
  0xec   : > { %v845_v4 = vpop.f32.mrf.mxu3  ;;  %1022 = vst [vmem:[%s1794_s9 + $0x2d0] sm:$0xff] %v816_v3  ;;  %v857_v5 = vpop.f32.mrf.mxu0 }
  0xed   : > { %v886_v6 = vpop.f32.mrf.mxu1  ;;  %1023 = vst [vmem:[%s1794_s9 + $0x2d8] sm:$0xff] %v845_v4 }
  0xee   : > { %968 = vst [vmem:[%s1794_s9 + $0x120] sm:$0xff] %v857_v5 }
  0xef   : > { %969 = vst [vmem:[%s1794_s9 + $0x128] sm:$0xff] %v886_v6 }
  0xf3   : > { %v915_v7 = vpop.f32.mrf.mxu2 }
  0xf4   : > { %v944_v8 = vpop.f32.mrf.mxu3  ;;  %970 = vst [vmem:[%s1794_s9 + $0x130] sm:$0xff] %v915_v7  ;;  %v859_v9 = vpop.f32.mrf.mxu0 }
  0xf5   : > { %v888_v10 = vpop.f32.mrf.mxu1  ;;  %971 = vst [vmem:[%s1794_s9 + $0x138] sm:$0xff] %v944_v8 }
  0xf6   : > { %976 = vst [vmem:[%s1794_s9 + $0x160] sm:$0xff] %v859_v9 }
  0xf7   : > { %977 = vst [vmem:[%s1794_s9 + $0x168] sm:$0xff] %v888_v10 }
  0xfb   : > { %v917_v11 = vpop.f32.mrf.mxu2 }
  0xfc   : > { %v946_v12 = vpop.f32.mrf.mxu3  ;;  %978 = vst [vmem:[%s1794_s9 + $0x170] sm:$0xff] %v917_v11  ;;  %v862_v13 = vpop.f32.mrf.mxu0 }
  0xfd   : > { %v891_v14 = vpop.f32.mrf.mxu1  ;;  %979 = vst [vmem:[%s1794_s9 + $0x178] sm:$0xff] %v946_v12 }
  0xfe   : > { %984 = vst [vmem:[%s1794_s9 + $0x1a0] sm:$0xff] %v862_v13 }
  0xff   : > { %985 = vst [vmem:[%s1794_s9 + $0x1a8] sm:$0xff] %v891_v14 }
 0x103   : > { %v920_v15 = vpop.f32.mrf.mxu2 }
 0x104   : > { %v949_v16 = vpop.f32.mrf.mxu3  ;;  %986 = vst [vmem:[%s1794_s9 + $0x1b0] sm:$0xff] %v920_v15  ;;  %v864_v17 = vpop.f32.mrf.mxu0 }
 0x105   : > { %v893_v18 = vpop.f32.mrf.mxu1  ;;  %987 = vst [vmem:[%s1794_s9 + $0x1b8] sm:$0xff] %v949_v16 }
 0x106   : > { %992 = vst [vmem:[%s1794_s9 + $0x1e0] sm:$0xff] %v864_v17 }
 0x107   : > { %993 = vst [vmem:[%s1794_s9 + $0x1e8] sm:$0xff] %v893_v18 }
 0x10b   : > { %v922_v19 = vpop.f32.mrf.mxu2 }
 0x10c   : > { %v951_v20 = vpop.f32.mrf.mxu3  ;;  %994 = vst [vmem:[%s1794_s9 + $0x1f0] sm:$0xff] %v922_v19  ;;  %v867_v21 = vpop.f32.mrf.mxu0 }
 0x10d   : > { %v896_v22 = vpop.f32.mrf.mxu1  ;;  %995 = vst [vmem:[%s1794_s9 + $0x1f8] sm:$0xff] %v951_v20 }
 0x10e   : > { %1000 = vst [vmem:[%s1794_s9 + $0x220] sm:$0xff] %v867_v21 }
 0x10f   : > { %1001 = vst [vmem:[%s1794_s9 + $0x228] sm:$0xff] %v896_v22 }
 0x113   : > { %v925_v23 = vpop.f32.mrf.mxu2 }
 0x114   : > { %v954_v24 = vpop.f32.mrf.mxu3  ;;  %1002 = vst [vmem:[%s1794_s9 + $0x230] sm:$0xff] %v925_v23  ;;  %v869_v25 = vpop.f32.mrf.mxu0 }
 0x115   : > { %v898_v26 = vpop.f32.mrf.mxu1  ;;  %1003 = vst [vmem:[%s1794_s9 + $0x238] sm:$0xff] %v954_v24 }
 0x116   : > { %1008 = vst [vmem:[%s1794_s9 + $0x260] sm:$0xff] %v869_v25 }
 0x117   : > { %1009 = vst [vmem:[%s1794_s9 + $0x268] sm:$0xff] %v898_v26 }
 0x11b   : > { %v927_v27 = vpop.f32.mrf.mxu2 }
 0x11c   : > { %v956_v28 = vpop.f32.mrf.mxu3  ;;  %1010 = vst [vmem:[%s1794_s9 + $0x270] sm:$0xff] %v927_v27  ;;  %v872_v29 = vpop.f32.mrf.mxu0 }
 0x11d   : > { %v901_v30 = vpop.f32.mrf.mxu1  ;;  %1011 = vst [vmem:[%s1794_s9 + $0x278] sm:$0xff] %v956_v28 }
 0x11e   : > { %1016 = vst [vmem:[%s1794_s9 + $0x2a0] sm:$0xff] %v872_v29 }
 0x11f   : > { %1017 = vst [vmem:[%s1794_s9 + $0x2a8] sm:$0xff] %v901_v30 }
 0x123   : > { %v930_v31 = vpop.f32.mrf.mxu2 }
 0x124   : > { %v959_v33 = vpop.f32.mrf.mxu3  ;;  %1018 = vst [vmem:[%s1794_s9 + $0x2b0] sm:$0xff] %v930_v31  ;;  %v874_v34 = vpop.f32.mrf.mxu0 }
 0x125   : > { %v903_v35 = vpop.f32.mrf.mxu1  ;;  %1019 = vst [vmem:[%s1794_s9 + $0x2b8] sm:$0xff] %v959_v33 }
 0x126   : > { %1024 = vst [vmem:[%s1794_s9 + $0x2e0] sm:$0xff] %v874_v34 }
 0x127   : > { %1025 = vst [vmem:[%s1794_s9 + $0x2e8] sm:$0xff] %v903_v35 }
 0x12b   : > { %v932_v36 = vpop.f32.mrf.mxu2 }
 0x12c   : > { %v961_v37 = vpop.f32.mrf.mxu3  ;;  %1026 = vst [vmem:[%s1794_s9 + $0x2f0] sm:$0xff] %v932_v36 }
 0x12d   : > { %1027 = vst [vmem:[%s1794_s9 + $0x2f8] sm:$0xff] %v961_v37 }
 0x12e PF: > { %s13_s14 = sadd.s32 1, %s1544_s14   ;;  %s2157_s12 = smov %s1540_s13 }
 0x12f   : > { %p10_p5 = scmp.ge.s32.totalorder %s13_s14, 4   ;;  %s2158_s13 = smov %s2160_s15 }
 0x131   :  { %12 = sbr.rel (!%p10_p5) target bundleno = 2 (0x2), region = 68 }

// kernel: ppm_forward.2
= control target key start
LH: loop header
LB: loop body
LE: loop exit
PB: predicated region body
PF: predicated region fallthrough
CT: control target
= control target key end

     0   :  { %vm937_vm0 = vcmask 261120   ;;  %s2428_s1 = inlined_call_operand.vmem [shape: bf16[1024,128], index: 1, kind: input, shape index: {}]   ;;  %s2429_s0 = inlined_call_operand.vmem [shape: f32[64,1024], index: 0, kind: input, shape index: {}]   ;;  %s2430_s3 = inlined_call_operand.vmem [shape: f32[64,1], index: 3, kind: input, shape index: {}]   ;;  %s2431_s4 = inlined_call_operand.vmem [shape: f32[64,1], index: 4, kind: input, shape index: {}]   ;;  %s2432_s2 = inlined_call_operand.vmem [shape: bf16[64,32], index: 2, kind: input, shape index: {}]   ;;  %s2433_s5 = inlined_call_operand.vmem [shape: f32[64,128], index: 5, kind: input, shape index: {}]   ;;  %s2434_s6 = inlined_call_operand.vmem [shape: bf16[2,64,128], index: 6, kind: output, shape index: {}]  }
   0x1   :  { %v1674_v0 = vld [vmem:[%s2428_s1 + $0x38] sm:$0xff]  ;;  %v1673_v2 = vld [vmem:[%s2428_s1 + $0x30] sm:$0xff]  ;;  %v1672_v4 = vld [vmem:[%s2428_s1 + $0x28] sm:$0xff] }
   0x2   :  { %v1682_v1 = vld [vmem:[%s2428_s1 + $0x78] sm:$0xff]  ;;  %1786 = vmatpush.bf16.msra.mxu2 %v1674_v0  ;;  %v1681_v3 = vld [vmem:[%s2428_s1 + $0x70] sm:$0xff]  ;;  %652 = vmatpush.bf16.msra.mxu0 %v1674_v0  ;;  %v1680_v5 = vld [vmem:[%s2428_s1 + $0x68] sm:$0xff] }
   0x3   :  { %1794 = vmatpush.bf16.msra.mxu3 %v1682_v1  ;;  %681 = vmatpush.bf16.msra.mxu1 %v1682_v1  ;;  %v1671_v6 = vld [vmem:[%s2428_s1 + $0x20] sm:$0xff]  ;;  %v1670_v8 = vld [vmem:[%s2428_s1 + $0x18] sm:$0xff]  ;;  %v1669_v10 = vld [vmem:[%s2428_s1 + $0x10] sm:$0xff] }
   0x4   :  { %v1679_v7 = vld [vmem:[%s2428_s1 + $0x60] sm:$0xff]  ;;  %v1678_v9 = vld [vmem:[%s2428_s1 + $0x58] sm:$0xff]  ;;  %v1677_v11 = vld [vmem:[%s2428_s1 + $0x50] sm:$0xff] }
   0x5   :  { %v1668_v12 = vld [vmem:[%s2428_s1 + $0x8] sm:$0xff]  ;;  %v1667_v14 = vld [vmem:[%s2428_s1] sm:$0xff]  ;;  %v1690_v20 = vld [vmem:[%s2428_s1 + $0xb8] sm:$0xff] }
   0x6   :  { %1787 = vmatpush.bf16.msra.mxu2 %v1673_v2  ;;  %653 = vmatpush.bf16.msra.mxu0 %v1673_v2  ;;  %v1676_v13 = vld [vmem:[%s2428_s1 + $0x48] sm:$0xff]  ;;  %v1675_v15 = vld [vmem:[%s2428_s1 + $0x40] sm:$0xff]  ;;  %v1698_v21 = vld [vmem:[%s2428_s1 + $0xf8] sm:$0xff] }
   0x7   :  { %1795 = vmatpush.bf16.msra.mxu3 %v1681_v3  ;;  %682 = vmatpush.bf16.msra.mxu1 %v1681_v3  ;;  %v76_v16 = vld [vmem:[%s2429_s0 + $0x100] sm:$0xff]  ;;  %v77_v18 = vld [vmem:[%s2429_s0 + $0x108] sm:$0xff]  ;;  %v1706_v28 = vld [vmem:[%s2428_s1 + $0x138] sm:$0xff] }
   0x8   :  { %v84_v17 = vld [vmem:[%s2429_s0 + $0x140] sm:$0xff]  ;;  %v85_v19 = vld [vmem:[%s2429_s0 + $0x148] sm:$0xff]  ;;  %v1714_v29 = vld [vmem:[%s2428_s1 + $0x178] sm:$0xff] }
   0x9   :  { %v44_v22 = vld [vmem:[%s2429_s0] sm:$0xff]  ;;  %v124_v23 = vpack.c.bf16 %v84_v17, %v76_v16  ;;  %v125_v24 = vpack.c.bf16 %v85_v19, %v77_v18  ;;  %v45_v26 = vld [vmem:[%s2429_s0 + $0x8] sm:$0xff]  ;;  %v1689_v30 = vld [vmem:[%s2428_s1 + $0xb0] sm:$0xff] }
   0xa   :  { %1788 = vmatpush.bf16.msra.mxu2 %v1672_v4  ;;  %654 = vmatpush.bf16.msra.mxu0 %v1672_v4  ;;  %v52_v25 = vld [vmem:[%s2429_s0 + $0x40] sm:$0xff]  ;;  %v53_v27 = vld [vmem:[%s2429_s0 + $0x48] sm:$0xff]  ;;  %v1697_v31 = vld [vmem:[%s2428_s1 + $0xf0] sm:$0xff] }
   0xb   :  { %1796 = vmatpush.bf16.msra.mxu3 %v1680_v5  ;;  %683 = vmatpush.bf16.msra.mxu1 %v1680_v5  ;;  %v108_v32 = vpack.c.bf16 %v52_v25, %v44_v22  ;;  %v109_v33 = vpack.c.bf16 %v53_v27, %v45_v26  ;;  %v1705_v34 = vld [vmem:[%s2428_s1 + $0x130] sm:$0xff]  ;;  %v1688_v36 = vld [vmem:[%s2428_s1 + $0xa8] sm:$0xff]  ;;  %v1687_v40 = vld [vmem:[%s2428_s1 + $0xa0] sm:$0xff] }
   0xc   :  { %v1713_v35 = vld [vmem:[%s2428_s1 + $0x170] sm:$0xff]  ;;  %v1696_v37 = vld [vmem:[%s2428_s1 + $0xe8] sm:$0xff]  ;;  %v1695_v41 = vld [vmem:[%s2428_s1 + $0xe0] sm:$0xff] }
   0xd   :  { %v1704_v38 = vld [vmem:[%s2428_s1 + $0x128] sm:$0xff]  ;;  %v92_v42 = vld [vmem:[%s2429_s0 + $0x180] sm:$0xff]  ;;  %v1686_v48 = vld [vmem:[%s2428_s1 + $0x98] sm:$0xff] }
   0xe   :  { %1789 = vmatpush.bf16.msra.mxu2 %v1671_v6  ;;  %655 = vmatpush.bf16.msra.mxu0 %v1671_v6  ;;  %v1712_v39 = vld [vmem:[%s2428_s1 + $0x168] sm:$0xff]  ;;  %v100_v43 = vld [vmem:[%s2429_s0 + $0x1c0] sm:$0xff]  ;;  %v1694_v49 = vld [vmem:[%s2428_s1 + $0xd8] sm:$0xff] }
   0xf   :  { %1797 = vmatpush.bf16.msra.mxu3 %v1679_v7  ;;  %684 = vmatpush.bf16.msra.mxu1 %v1679_v7  ;;  %v93_v44 = vld [vmem:[%s2429_s0 + $0x188] sm:$0xff]  ;;  %v1703_v46 = vld [vmem:[%s2428_s1 + $0x120] sm:$0xff]  ;;  %v132_v51 = vpack.c.bf16 %v100_v43, %v92_v42  ;;  %v1702_v56 = vld [vmem:[%s2428_s1 + $0x118] sm:$0xff] }
  0x10   :  { %v101_v45 = vld [vmem:[%s2429_s0 + $0x1c8] sm:$0xff]  ;;  %v1711_v47 = vld [vmem:[%s2428_s1 + $0x160] sm:$0xff]  ;;  %v1710_v57 = vld [vmem:[%s2428_s1 + $0x158] sm:$0xff] }
  0x11   :  { %v60_v50 = vld [vmem:[%s2429_s0 + $0x80] sm:$0xff]  ;;  %v133_v52 = vpack.c.bf16 %v101_v45, %v93_v44  ;;  %v61_v54 = vld [vmem:[%s2429_s0 + $0x88] sm:$0xff]  ;;  %v1685_v58 = vld [vmem:[%s2428_s1 + $0x90] sm:$0xff] }
  0x12   :  { %1790 = vmatpush.bf16.msra.mxu2 %v1670_v8  ;;  %656 = vmatpush.bf16.msra.mxu0 %v1670_v8  ;;  %v68_v53 = vld [vmem:[%s2429_s0 + $0xc0] sm:$0xff]  ;;  %v69_v55 = vld [vmem:[%s2429_s0 + $0xc8] sm:$0xff]  ;;  %v1693_v59 = vld [vmem:[%s2428_s1 + $0xd0] sm:$0xff] }
  0x13   :  { %1798 = vmatpush.bf16.msra.mxu3 %v1678_v9  ;;  %685 = vmatpush.bf16.msra.mxu1 %v1678_v9  ;;  %v116_v60 = vpack.c.bf16 %v68_v53, %v60_v50  ;;  %v117_v61 = vpack.c.bf16 %v69_v55, %v61_v54  ;;  %v1701_v62 = vld [vmem:[%s2428_s1 + $0x110] sm:$0xff]  ;;  %v1684_v0 = vld [vmem:[%s2428_s1 + $0x88] sm:$0xff]  ;;  %v1683_v4 = vld [vmem:[%s2428_s1 + $0x80] sm:$0xff] }
  0x14   :  { %v1709_v63 = vld [vmem:[%s2428_s1 + $0x150] sm:$0xff]  ;;  %v1692_v1 = vld [vmem:[%s2428_s1 + $0xc8] sm:$0xff]  ;;  %v1691_v5 = vld [vmem:[%s2428_s1 + $0xc0] sm:$0xff] }
  0x15   :  { %v1700_v2 = vld [vmem:[%s2428_s1 + $0x108] sm:$0xff]  ;;  %v46_v6 = vld [vmem:[%s2429_s0 + $0x10] sm:$0xff]  ;;  %v47_v8 = vld [vmem:[%s2429_s0 + $0x18] sm:$0xff] }
  0x16   :  { %1791 = vmatpush.bf16.msra.mxu2 %v1669_v10  ;;  %657 = vmatpush.bf16.msra.mxu0 %v1669_v10  ;;  %v1708_v3 = vld [vmem:[%s2428_s1 + $0x148] sm:$0xff]  ;;  %v54_v7 = vld [vmem:[%s2429_s0 + $0x50] sm:$0xff]  ;;  %v55_v9 = vld [vmem:[%s2429_s0 + $0x58] sm:$0xff] }
  0x17   :  { %1799 = vmatpush.bf16.msra.mxu3 %v1677_v11  ;;  %686 = vmatpush.bf16.msra.mxu1 %v1677_v11  ;;  %v1699_v10 = vld [vmem:[%s2428_s1 + $0x100] sm:$0xff]  ;;  %v49_v16 = vld [vmem:[%s2429_s0 + $0x28] sm:$0xff]  ;;  %v1721_v22 = vld [vmem:[%s2428_s1 + $0x1b0] sm:$0xff] }
  0x18   :  { %v1707_v11 = vld [vmem:[%s2428_s1 + $0x140] sm:$0xff]  ;;  %v57_v17 = vld [vmem:[%s2429_s0 + $0x68] sm:$0xff]  ;;  %v62_v26 = vld [vmem:[%s2429_s0 + $0x90] sm:$0xff] }
  0x19   :  { %v113_v19 = vpack.c.bf16 %v57_v17, %v49_v16  ;;  %v1728_v25 = vld [vmem:[%s2428_s1 + $0x1e8] sm:$0xff]  ;;  %v70_v27 = vld [vmem:[%s2429_s0 + $0xd0] sm:$0xff]  ;;  %v1715_v50 = vld [vmem:[%s2428_s1 + $0x180] sm:$0xff] }
  0x1a   :  { %1792 = vmatpush.bf16.msra.mxu2 %v1668_v12  ;;  %658 = vmatpush.bf16.msra.mxu0 %v1668_v12  ;;  %v48_v12 = vld [vmem:[%s2429_s0 + $0x20] sm:$0xff]  ;;  %v1717_v42 = vld [vmem:[%s2428_s1 + $0x190] sm:$0xff]  ;;  %v1716_v44 = vld [vmem:[%s2428_s1 + $0x188] sm:$0xff] }
  0x1b   :  { %1800 = vmatpush.bf16.msra.mxu3 %v1676_v13  ;;  %687 = vmatpush.bf16.msra.mxu1 %v1676_v13  ;;  %v110_v13 = vpack.c.bf16 %v54_v7, %v46_v6  ;;  %v1725_v43 = vld [vmem:[%s2428_s1 + $0x1d0] sm:$0xff]  ;;  %v1724_v45 = vld [vmem:[%s2428_s1 + $0x1c8] sm:$0xff]  ;;  %v88_v55 = vld [vmem:[%s2429_s0 + $0x160] sm:$0xff] }
  0x1c   :  { %v67_v16 = vld [vmem:[%s2429_s0 + $0xb8] sm:$0xff] }
  0x1d   :  { %v75_v17 = vld [vmem:[%s2429_s0 + $0xf8] sm:$0xff] }
  0x1e   :  { %1793 = vmatpush.bf16.msra.mxu2 %v1667_v14  ;;  %659 = vmatpush.bf16.msra.mxu0 %v1667_v14  ;;  %v111_v14 = vpack.c.bf16 %v55_v9, %v47_v8  ;;  %v50_v8 = vld [vmem:[%s2429_s0 + $0x30] sm:$0xff] }
  0x1f   :  { %1801 = vmatpush.bf16.msra.mxu3 %v1675_v15  ;;  %688 = vmatpush.bf16.msra.mxu1 %v1675_v15  ;;  %v56_v15 = vld [vmem:[%s2429_s0 + $0x60] sm:$0xff]  ;;  %v58_v9 = vld [vmem:[%s2429_s0 + $0x70] sm:$0xff] }
  0x20   :  { %v112_v18 = vpack.c.bf16 %v56_v15, %v48_v12  ;;  %v114_v12 = vpack.c.bf16 %v58_v9, %v50_v8  ;;  %v74_v15 = vld [vmem:[%s2429_s0 + $0xf0] sm:$0xff]  ;;  %v2260_v8 = vld [vmem:[%s2430_s3 + $0x38] sm:$0xff] }
  0x21   :  { %670 = vmatmul.bf16.vlgmr.msra.gmra.mxu2 %v124_v23  ;;  %660 = vmatmul.bf16.vlgmr.msra.gmra.mxu0 %v108_v32  ;;  %v1729_v23 = vld [vmem:[%s2428_s1 + $0x1f0] sm:$0xff]  ;;  %v64_v32 = vld [vmem:[%s2429_s0 + $0xa0] sm:$0xff] }
  0x22   :  { %710 = vmatpush.bf16.msrb.mxu2 %v1690_v20  ;;  %699 = vmatmul.bf16.vlgmr.msra.gmra.mxu3 %v125_v24  ;;  %v1722_v20 = vld [vmem:[%s2428_s1 + $0x1b8] sm:$0xff]  ;;  %v1720_v24 = vld [vmem:[%s2428_s1 + $0x1a8] sm:$0xff]  ;;  %v985_v9 = vld [vmem:[%s2430_s3 + $0x30] sm:$0xff] }
  0x23   :  { %739 = vmatpush.bf16.msrb.mxu3 %v1698_v21  ;;  %768 = vmatpush.bf16.msrb.mxu0 %v1706_v28  ;;  %v1730_v21 = vld [vmem:[%s2428_s1 + $0x1f8] sm:$0xff] }
  0x24   :  { %797 = vmatpush.bf16.msrb.mxu1 %v1714_v29  ;;  %v63_v28 = vld [vmem:[%s2429_s0 + $0x98] sm:$0xff] }
  0x25   :  { %689 = vmatmul.bf16.vlgmr.msra.gmra.mxu1 %v109_v33  ;;  %v71_v29 = vld [vmem:[%s2429_s0 + $0xd8] sm:$0xff]  ;;  %v118_v33 = vpack.c.bf16 %v70_v27, %v62_v26 }
  0x26   :  { %711 = vmatpush.bf16.msrb.mxu2 %v1689_v30  ;;  %v1719_v30 = vld [vmem:[%s2428_s1 + $0x1a0] sm:$0xff] }
  0x27   :  { %740 = vmatpush.bf16.msrb.mxu3 %v1697_v31  ;;  %769 = vmatpush.bf16.msrb.mxu0 %v1705_v34  ;;  %v1727_v31 = vld [vmem:[%s2428_s1 + $0x1e0] sm:$0xff]  ;;  %v119_v34 = vpack.c.bf16 %v71_v29, %v63_v28  ;;  %v98_v29 = vld [vmem:[%s2429_s0 + $0x1b0] sm:$0xff] }
  0x28   :  { %798 = vmatpush.bf16.msrb.mxu1 %v1713_v35  ;;  %v72_v35 = vld [vmem:[%s2429_s0 + $0xe0] sm:$0xff] }
  0x2a   :  { %712 = vmatpush.bf16.msrb.mxu2 %v1688_v36  ;;  %v65_v36 = vld [vmem:[%s2429_s0 + $0xa8] sm:$0xff] }
  0x2b   :  { %741 = vmatpush.bf16.msrb.mxu3 %v1696_v37  ;;  %770 = vmatpush.bf16.msrb.mxu0 %v1704_v38  ;;  %v73_v37 = vld [vmem:[%s2429_s0 + $0xe8] sm:$0xff]  ;;  %v120_v38 = vpack.c.bf16 %v72_v35, %v64_v32  ;;  %v107_v32 = vld [vmem:[%s2429_s0 + $0x1f8] sm:$0xff] }
  0x2c   :  { %799 = vmatpush.bf16.msrb.mxu1 %v1712_v39  ;;  %v121_v39 = vpack.c.bf16 %v73_v37, %v65_v36 }
  0x2e   :  { %713 = vmatpush.bf16.msrb.mxu2 %v1687_v40  ;;  %v1718_v40 = vld [vmem:[%s2428_s1 + $0x198] sm:$0xff] }
  0x2f   :  { %742 = vmatpush.bf16.msrb.mxu3 %v1695_v41  ;;  %771 = vmatpush.bf16.msrb.mxu0 %v1703_v46  ;;  %v1726_v41 = vld [vmem:[%s2428_s1 + $0x1d8] sm:$0xff]  ;;  %v78_v46 = vld [vmem:[%s2429_s0 + $0x110] sm:$0xff] }
  0x30   :  { %800 = vmatpush.bf16.msrb.mxu1 %v1711_v47  ;;  %v86_v47 = vld [vmem:[%s2429_s0 + $0x150] sm:$0xff] }
  0x31   :  { %675 = vmatmul.bf16.gmra.mxu2 %v132_v51  ;;  %665 = vmatmul.bf16.gmra.mxu0 %v116_v60  ;;  %v1723_v51 = vld [vmem:[%s2428_s1 + $0x1c0] sm:$0xff]  ;;  %v126_v53 = vpack.c.bf16 %v86_v47, %v78_v46  ;;  %v94_v60 = vld [vmem:[%s2429_s0 + $0x190] sm:$0xff] }
  0x32   :  { %714 = vmatpush.bf16.msrb.mxu2 %v1686_v48  ;;  %704 = vmatmul.bf16.gmra.mxu3 %v133_v52  ;;  %v79_v48 = vld [vmem:[%s2429_s0 + $0x118] sm:$0xff]  ;;  %v80_v52 = vld [vmem:[%s2429_s0 + $0x120] sm:$0xff] }
  0x33   :  { %743 = vmatpush.bf16.msrb.mxu3 %v1694_v49  ;;  %772 = vmatpush.bf16.msrb.mxu0 %v1702_v56  ;;  %v87_v49 = vld [vmem:[%s2429_s0 + $0x158] sm:$0xff]  ;;  %v81_v56 = vld [vmem:[%s2429_s0 + $0x128] sm:$0xff] }
  0x34   :  { %801 = vmatpush.bf16.msrb.mxu1 %v1710_v57  ;;  %v127_v54 = vpack.c.bf16 %v87_v49, %v79_v48  ;;  %v89_v57 = vld [vmem:[%s2429_s0 + $0x168] sm:$0xff] }
  0x35   :  { %694 = vmatmul.bf16.gmra.mxu1 %v117_v61  ;;  %v102_v61 = vld [vmem:[%s2429_s0 + $0x1d0] sm:$0xff] }
  0x36   :  { %715 = vmatpush.bf16.msrb.mxu2 %v1685_v58  ;;  %v128_v58 = vpack.c.bf16 %v88_v55, %v80_v52 }
  0x37   :  { %744 = vmatpush.bf16.msrb.mxu3 %v1693_v59  ;;  %773 = vmatpush.bf16.msrb.mxu0 %v1701_v62  ;;  %v129_v59 = vpack.c.bf16 %v89_v57, %v81_v56  ;;  %v95_v62 = vld [vmem:[%s2429_s0 + $0x198] sm:$0xff]  ;;  %v1806_v57 = vmov 0  }
  0x38   :  { %802 = vmatpush.bf16.msrb.mxu1 %v1709_v63  ;;  %v103_v63 = vld [vmem:[%s2429_s0 + $0x1d8] sm:$0xff]  ;;  %1804 = vset.pattern.permute.xlu1 %v1806_v57 }
  0x39   :  { %1803 = vset.pattern.permute.xlu0 %v1806_v57  ;;  %1805 = vset.pattern.permute.xlu2 %v1806_v57 }
  0x3a   :  { %716 = vmatpush.bf16.msrb.mxu2 %v1684_v0  ;;  %v96_v0 = vld [vmem:[%s2429_s0 + $0x1a0] sm:$0xff] }
  0x3b   :  { %745 = vmatpush.bf16.msrb.mxu3 %v1692_v1  ;;  %774 = vmatpush.bf16.msrb.mxu0 %v1700_v2  ;;  %v134_v1 = vpack.c.bf16 %v102_v61, %v94_v60  ;;  %v135_v2 = vpack.c.bf16 %v103_v63, %v95_v62 }
  0x3c   :  { %803 = vmatpush.bf16.msrb.mxu1 %v1708_v3  ;;  %v104_v3 = vld [vmem:[%s2429_s0 + $0x1e0] sm:$0xff] }
  0x3d   :  { %v136_v6 = vpack.c.bf16 %v104_v3, %v96_v0  ;;  %v982_v3 = vld [vmem:[%s2430_s3 + $0x18] sm:$0xff] }
  0x3e   :  { %717 = vmatpush.bf16.msrb.mxu2 %v1683_v4  ;;  %v97_v4 = vld [vmem:[%s2429_s0 + $0x1a8] sm:$0xff] }
  0x3f   :  { %746 = vmatpush.bf16.msrb.mxu3 %v1691_v5  ;;  %775 = vmatpush.bf16.msrb.mxu0 %v1699_v10  ;;  %v105_v5 = vld [vmem:[%s2429_s0 + $0x1e8] sm:$0xff]  ;;  %v51_v10 = vld [vmem:[%s2429_s0 + $0x38] sm:$0xff] }
  0x40   :  { %804 = vmatpush.bf16.msrb.mxu1 %v1707_v11  ;;  %v137_v7 = vpack.c.bf16 %v105_v5, %v97_v4  ;;  %v59_v11 = vld [vmem:[%s2429_s0 + $0x78] sm:$0xff]  ;;  %v2248_v4 = vld [vmem:[%s2430_s3 + $0x8] sm:$0xff] }
  0x41   :  { %718 = vmatmul.bf16.vlgmr.msrb.gmra.mxu2 %v110_v13  ;;  %v115_v13 = vpack.c.bf16 %v59_v11, %v51_v10 }
  0x42   :  { %747 = vmatmul.bf16.vlgmr.msrb.gmra.mxu3 %v111_v14  ;;  %826 = vmatpush.bf16.msra.mxu2 %v1722_v20  ;;  %v66_v14 = vld [vmem:[%s2429_s0 + $0xb0] sm:$0xff] }
  0x43   :  { %855 = vmatpush.bf16.msra.mxu3 %v1730_v21  ;;  %776 = vmatmul.bf16.vlgmr.msrb.gmra.mxu0 %v112_v18  ;;  %v122_v18 = vpack.c.bf16 %v74_v15, %v66_v14  ;;  %v82_v20 = vld [vmem:[%s2429_s0 + $0x130] sm:$0xff]  ;;  %v1036_v15 = vld [vmem:[%s2431_s4 + $0x8] sm:$0xff] }
  0x44   :  { %v90_v21 = vld [vmem:[%s2429_s0 + $0x170] sm:$0xff] }
  0x45   :  { %805 = vmatmul.bf16.vlgmr.msrb.gmra.mxu1 %v113_v19  ;;  %v123_v19 = vpack.c.bf16 %v75_v17, %v67_v16  ;;  %v2269_v14 = vld [vmem:[%s2431_s4 + $0x10] sm:$0xff] }
  0x46   :  { %827 = vmatpush.bf16.msra.mxu2 %v1721_v22  ;;  %v83_v22 = vld [vmem:[%s2429_s0 + $0x138] sm:$0xff] }
  0x47   :  { %856 = vmatpush.bf16.msra.mxu3 %v1729_v23  ;;  %v91_v23 = vld [vmem:[%s2429_s0 + $0x178] sm:$0xff] }
  0x4a   :  { %828 = vmatpush.bf16.msra.mxu2 %v1720_v24  ;;  %v130_v24 = vpack.c.bf16 %v90_v21, %v82_v20 }
  0x4b   :  { %857 = vmatpush.bf16.msra.mxu3 %v1728_v25  ;;  %v131_v25 = vpack.c.bf16 %v91_v23, %v83_v22  ;;  %v2281_v22 = vld [vmem:[%s2431_s4 + $0x28] sm:$0xff]  ;;  %v1039_v23 = vld [vmem:[%s2431_s4 + $0x20] sm:$0xff] }
  0x4e   :  { %829 = vmatpush.bf16.msra.mxu2 %v1719_v30  ;;  %v106_v30 = vld [vmem:[%s2429_s0 + $0x1f0] sm:$0xff] }
  0x4f   :  { %858 = vmatpush.bf16.msra.mxu3 %v1727_v31  ;;  %v99_v31 = vld [vmem:[%s2429_s0 + $0x1b8] sm:$0xff]  ;;  %v138_v36 = vpack.c.bf16 %v106_v30, %v98_v29  ;;  %v2293_v29 = vld [vmem:[%s2430_s3 + $0x20] sm:$0xff] }
  0x50   :  { %v139_v37 = vpack.c.bf16 %v107_v32, %v99_v31  ;;  %v1042_v30 = vld [vmem:[%s2431_s4 + $0x38] sm:$0xff]  ;;  %1009 = vperm.xlu2 %1805, %v2293_v29  }
  0x51   :  { %723 = vmatmul.bf16.gmra.mxu2 %v118_v33 }
  0x52   :  { %752 = vmatmul.bf16.gmra.mxu3 %v119_v34  ;;  %830 = vmatpush.bf16.msra.mxu2 %v1718_v40 }
  0x53   :  { %859 = vmatpush.bf16.msra.mxu3 %v1726_v41  ;;  %781 = vmatmul.bf16.gmra.mxu0 %v120_v38 }
  0x55   :  { %810 = vmatmul.bf16.gmra.mxu1 %v121_v39 }
  0x56   :  { %831 = vmatpush.bf16.msra.mxu2 %v1717_v42 }
  0x57   :  { %860 = vmatpush.bf16.msra.mxu3 %v1725_v43 }
  0x5a   :  { %832 = vmatpush.bf16.msra.mxu2 %v1716_v44 }
  0x5b   :  { %861 = vmatpush.bf16.msra.mxu3 %v1724_v45 }
  0x5e   :  { %833 = vmatpush.bf16.msra.mxu2 %v1715_v50 }
  0x5f   :  { %862 = vmatpush.bf16.msra.mxu3 %v1723_v51 }
  0x61   :  { %728 = vmatmul.bf16.gmra.mxu2 %v126_v53 }
  0x62   :  { %757 = vmatmul.bf16.gmra.mxu3 %v127_v54 }
  0x63   :  { %786 = vmatmul.bf16.gmra.mxu0 %v128_v58  ;;  %v981_v58 = vld [vmem:[%s2430_s3 + $0x10] sm:$0xff] }
  0x64   :  { %999 = vperm.xlu1 %1804, %v981_v58  }
  0x65   :  { %815 = vmatmul.bf16.gmra.mxu1 %v129_v59  ;;  %v979_v59 = vld [vmem:[%s2430_s3] sm:$0xff] }
  0x66   :  { %989 = vperm.xlu0 %1803, %v979_v59  }
  0x6c   :  { %1004 = vperm.xlu1 %1804, %v982_v3  }
  0x6e   :  { %994 = vperm.xlu0 %1803, %v2248_v4  }
  0x71   :  { %733 = vmatmul.bf16.gmra.mxu2 %v134_v1 }
  0x72   :  { %762 = vmatmul.bf16.gmra.mxu3 %v135_v2 }
  0x73   :  { %791 = vmatmul.bf16.gmra.mxu0 %v136_v6 }
  0x74   :  { %1024 = vperm.xlu1 %1804, %v2260_v8  }
  0x75   :  { %820 = vmatmul.bf16.gmra.mxu1 %v137_v7 }
  0x76   :  { %1019 = vperm.xlu0 %1803, %v985_v9  }
  0x7c   :  { %1055 = vperm.xlu1 %1804, %v2269_v14  }
  0x7e   :  { %1050 = vperm.xlu0 %1803, %v1036_v15  }
  0x81   :  { %834 = vmatmul.bf16.vlgmr.msra.gmra.mxu2 %v114_v12 }
  0x82   :  { %863 = vmatmul.bf16.vlgmr.msra.gmra.mxu3 %v115_v13 }
  0x84   :  { %1070 = vperm.xlu1 %1804, %v2281_v22  }
  0x86   :  { %1065 = vperm.xlu0 %1803, %v1039_v23  }
  0x8c   :  { %1216 = vperm.xlu1 %1804, %v979_v59  }
  0x8e   :  { %1080 = vperm.xlu0 %1803, %v1042_v30  }
  0x91   :  { %839 = vmatmul.bf16.gmra.mxu2 %v122_v18 }
  0x92   :  { %868 = vmatmul.bf16.gmra.mxu3 %v123_v19 }
  0x94   :  { %1231 = vperm.xlu1 %1804, %v982_v3  }
  0x96   :  { %1226 = vperm.xlu0 %1803, %v981_v58  }
  0x9c   :  { %1246 = vperm.xlu1 %1804, %v985_v9  }
  0x9e   :  { %v661_v41 = vpop.f32.mrf.mxu0 }
  0xa1   :  { %844 = vmatmul.bf16.gmra.mxu2 %v130_v24 }
  0xa2   :  { %873 = vmatmul.bf16.gmra.mxu3 %v131_v25  ;;  %v690_v42 = vpop.f32.mrf.mxu1 }
  0xa3   :  { %v691_v46 = vadd.f32 %v690_v42, %v661_v41  ;;  %v1035_v42 = vld [vmem:[%s2431_s4] sm:$0xff] }
  0xa4   :  { %v671_v26 = vpop.f32.mrf.mxu2  ;;  %1277 = vperm.xlu1 %1804, %v1036_v15  }
  0xa5   :  { %v700_v27 = vpop.f32.mrf.mxu3 }
  0xa6   :  { %v701_v28 = vadd.f32 %v700_v27, %v671_v26  ;;  %v663_v50 = vpop.f32.mrf.mxu0 }
  0xaa   :  { %v692_v51 = vpop.f32.mrf.mxu1 }
  0xab   :  { %v693_v53 = vadd.f32 %v692_v51, %v663_v50 }
  0xac   :  { %v673_v33 = vpop.f32.mrf.mxu2  ;;  %1292 = vperm.xlu1 %1804, %v1039_v23  }
  0xad   :  { %v702_v34 = vpop.f32.mrf.mxu3 }
  0xae   :  { %v2226_v35 = vadd.f32 %v702_v34, %v673_v33  ;;  %v666_v61 = vpop.f32.mrf.mxu0 }
  0xb1   :  { %849 = vmatmul.bf16.gmra.mxu2 %v138_v36  ;;  %v984_v36 = vld [vmem:[%s2430_s3 + $0x28] sm:$0xff] }
  0xb2   :  { %878 = vmatmul.bf16.gmra.mxu3 %v139_v37  ;;  %v695_v62 = vpop.f32.mrf.mxu1  ;;  %1014 = vperm.xlu2 %1805, %v984_v36  }
  0xb3   :  { %v696_v63 = vadd.f32 %v695_v62, %v666_v61  ;;  %1241 = vperm.xlu0 %1803, %v984_v36  }
  0xb4   :  { %v676_v38 = vpop.f32.mrf.mxu2  ;;  %1307 = vperm.xlu1 %1804, %v1042_v30  }
  0xb5   :  { %v705_v39 = vpop.f32.mrf.mxu3 }
  0xb6   :  { %v2228_v40 = vadd.f32 %v705_v39, %v676_v38  ;;  %v668_v10 = vpop.f32.mrf.mxu0 }
  0xba   :  { %v697_v16 = vpop.f32.mrf.mxu1  ;;  %1045 = vperm.xlu2 %1805, %v1035_v42  }
  0xbb   :  { %1272 = vperm.xlu0 %1803, %v1035_v42   ;;  %v1732_v42 = vld [vmem:[%s2432_s2 + $0x8] sm:$0xff] }
  0xbc   :  { %v678_v43 = vpop.f32.mrf.mxu2 }
  0xbd   :  { %v707_v44 = vpop.f32.mrf.mxu3 }
  0xbe   :  { %v2230_v45 = vadd.f32 %v707_v44, %v678_v43 }
  0xc0   :  { %v777_v20 = vpop.f32.mrf.mxu0 }
  0xc2   :  { %v806_v25 = vpop.f32.mrf.mxu1 }
  0xc4   :  { %v719_v47 = vpop.f32.mrf.mxu2 }
  0xc5   :  { %v748_v48 = vpop.f32.mrf.mxu3  ;;  %v720_v49 = vadd.f32 %v719_v47, %v691_v46  ;;  %v698_v46 = vadd.f32 %v697_v16, %v668_v10 }
  0xc7   :  { %v2232_v52 = vadd.f32 %v748_v48, %v720_v49 }
  0xc8   :  { %v779_v31 = vpop.f32.mrf.mxu0 }
  0xca   :  { %v808_v33 = vpop.f32.mrf.mxu1 }
  0xcc   :  { %v721_v54 = vpop.f32.mrf.mxu2 }
  0xcd   :  { %v750_v55 = vpop.f32.mrf.mxu3  ;;  %v722_v56 = vadd.f32 %v721_v54, %v693_v53 }
  0xcf   :  { %v2240_v60 = vadd.f32 %v750_v55, %v722_v56 }
  0xd0   :  { %v782_v37 = vpop.f32.mrf.mxu0 }
  0xd1   :  { %v780_v43 = vadd.f32 %v779_v31, %v2240_v60 }
  0xd2   :  { %v811_v41 = vpop.f32.mrf.mxu1 }
  0xd3   :  { %v809_v47 = vadd.f32 %v808_v33, %v780_v43 }
  0xd4   :  { %v724_v0 = vpop.f32.mrf.mxu2 }
  0xd5   :  { %v753_v1 = vpop.f32.mrf.mxu3  ;;  %v725_v2 = vadd.f32 %v724_v0, %v696_v63  ;;  %v1041_v0 = vld [vmem:[%s2431_s4 + $0x30] sm:$0xff] }
  0xd7   :  { %v2250_v5 = vadd.f32 %v753_v1, %v725_v2 }
  0xd8   :  { %v784_v48 = vpop.f32.mrf.mxu0 }
  0xd9   :  { %v783_v62 = vadd.f32 %v782_v37, %v2250_v5 }
  0xda   :  { %v813_v55 = vpop.f32.mrf.mxu1 }
  0xdb   :  { %v812_v2 = vadd.f32 %v811_v41, %v783_v62 }
  0xdc   :  { %v2253_v6 = vpop.f32.mrf.mxu2 }
  0xdd   :  { %v2255_v7 = vpop.f32.mrf.mxu3  ;;  %v727_v54 = vadd.f32 %v2253_v6, %v698_v46 }
  0xdf   :  { %v756_v59 = vadd.f32 %v2255_v7, %v727_v54  ;;  %v990_v54 = vpop.permute.xlu0 %989 }
  0xe0   :  { %v787_v63 = vpop.f32.mrf.mxu0 }
  0xe1   :  { %v785_v1 = vadd.f32 %v784_v48, %v756_v59 }
  0xe2   :  { %v816_v3 = vpop.f32.mrf.mxu1 }
  0xe3   :  { %v814_v6 = vadd.f32 %v813_v55, %v785_v1  ;;  %v1000_v55 = vpop.permute.xlu1 %999 }
  0xe4   :  { %v729_v11 = vpop.f32.mrf.mxu2 }
  0xe5   :  { %v758_v12 = vpop.f32.mrf.mxu3  ;;  %v730_v13 = vadd.f32 %v729_v11, %v701_v28 }
  0xe7   :  { %v2274_v17 = vadd.f32 %v758_v12, %v730_v13 }
  0xe8   :  { %v789_v12 = vpop.f32.mrf.mxu0 }
  0xea   :  { %v818_v16 = vpop.f32.mrf.mxu1 }
  0xec   :  { %v731_v18 = vpop.f32.mrf.mxu2 }
  0xed   :  { %v760_v19 = vpop.f32.mrf.mxu3  ;;  %v732_v21 = vadd.f32 %v731_v18, %v2226_v35 }
  0xef   :  { %v2286_v24 = vadd.f32 %v760_v19, %v732_v21  ;;  %v1731_v21 = vld [vmem:[%s2432_s2] sm:$0xff] }
  0xf1   :  { %v790_v23 = vadd.f32 %v789_v12, %v2286_v24 }
  0xf4   :  { %v734_v26 = vpop.f32.mrf.mxu2 }
  0xf5   :  { %v763_v27 = vpop.f32.mrf.mxu3  ;;  %v735_v28 = vadd.f32 %v734_v26, %v2228_v40  ;;  %v778_v40 = vadd.f32 %v777_v20, %v2232_v52  ;;  %v1038_v52 = vld [vmem:[%s2431_s4 + $0x18] sm:$0xff]  ;;  %v788_v20 = vadd.f32 %v787_v63, %v2274_v17  ;;  %v819_v26 = vadd.f32 %v818_v16, %v790_v23  ;;  %v821_v17 = vpop.f32.mrf.mxu1 }
  0xf6   :  { %1060 = vperm.xlu2 %1805, %v1038_v52   ;;  %1287 = vperm.xlu0 %1803, %v1038_v52   ;;  %v1738_v52 = vld [vmem:[%s2432_s2 + $0x18] sm:$0xff] }
  0xf7   :  { %v2298_v32 = vadd.f32 %v763_v27, %v735_v28  ;;  %v807_v44 = vadd.f32 %v806_v25, %v778_v40  ;;  %v792_v25 = vpop.f32.mrf.mxu0 }
  0xf9   :  { %v793_v41 = vadd.f32 %v792_v25, %v2298_v32 }
  0xfc   :  { %v2301_v34 = vpop.f32.mrf.mxu2 }
  0xfd   :  { %v2303_v35 = vpop.f32.mrf.mxu3  ;;  %v737_v33 = vadd.f32 %v2301_v34, %v2230_v45  ;;  %v823_v45 = vpop.f32.mrf.mxu1  ;;  %v822_v34 = vadd.f32 %v821_v17, %v793_v41 }
  0xfe   :  { %1075 = vperm.xlu2 %1805, %v1041_v0   ;;  %1302 = vperm.xlu0 %1803, %v1041_v0  }
 0x104   :  { %v835_v38 = vpop.f32.mrf.mxu2 }
 0x105   :  { %v864_v39 = vpop.f32.mrf.mxu3  ;;  %v836_v49 = vadd.f32 %v835_v38, %v807_v44  ;;  %v794_v38 = vpop.f32.mrf.mxu0 }
 0x106   :  { %1221 = vperm.xlu2 %1805, %v2248_v4   ;;  %v817_v4 = vadd.f32 %v816_v3, %v788_v20 }
 0x107   :  { %v865_v56 = vadd.f32 %v864_v39, %v836_v49 }
 0x10c   :  { %v837_v50 = vpop.f32.mrf.mxu2 }
 0x10d   :  { %v866_v51 = vpop.f32.mrf.mxu3  ;;  %v838_v53 = vadd.f32 %v837_v50, %v809_v47  ;;  %v1735_v50 = vld [vmem:[%s2432_s2] sm:$0xff] }
 0x10e   :  { %1236 = vperm.xlu2 %1805, %v2293_v29   ;;  %v766_v29 = vadd.f32 %v2303_v35, %v737_v33 }
 0x10f   :  { %v867_v57 = vadd.f32 %v866_v51, %v838_v53  ;;  %v1736_v51 = vld [vmem:[%s2432_s2 + $0x8] sm:$0xff]  ;;  %v1737_v53 = vld [vmem:[%s2432_s2 + $0x10] sm:$0xff] }
 0x110   :  { %v795_v43 = vadd.f32 %v794_v38, %v766_v29  ;;  %v1102_v29 = vld [vmem:[%s2433_s5 + $0x18] sm:$0xff] }
 0x111   :  { %v907_v58 = vpack.c.bf16 %v867_v57, %v865_v56  ;;  %v995_v56 = vpop.permute.xlu0 %994  ;;  %v1005_v57 = vpop.permute.xlu1 %1004 }
 0x114   :  { %v840_v60 = vpop.f32.mrf.mxu2 }
 0x115   :  { %v869_v61 = vpop.f32.mrf.mxu3  ;;  %v841_v9 = vadd.f32 %v840_v60, %v812_v2 }
 0x116   :  { %1251 = vperm.xlu2 %1805, %v2260_v8   ;;  %v824_v8 = vadd.f32 %v823_v45, %v795_v43 }
 0x117   :  { %v870_v13 = vadd.f32 %v869_v61, %v841_v9 }
 0x119   :  { %v2365_v59 = vpop.permute.xlu0 %1019  ;;  %v2367_v60 = vpop.permute.xlu1 %1024 }
 0x11c   :  { %v842_v10 = vpop.f32.mrf.mxu2 }
 0x11d   :  { %v871_v11 = vpop.f32.mrf.mxu3  ;;  %v843_v7 = vadd.f32 %v842_v10, %v814_v6 }
 0x11e   :  { %1282 = vperm.xlu2 %1805, %v2269_v14   ;;  %v1733_v14 = vld [vmem:[%s2432_s2 + $0x10] sm:$0xff] }
 0x11f   :  { %v872_v15 = vadd.f32 %v871_v11, %v843_v7 }
 0x121   :  { %v908_v5 = vpack.c.bf16 %v872_v15, %v870_v13  ;;  %v1051_v62 = vpop.permute.xlu0 %1050  ;;  %v1056_v63 = vpop.permute.xlu1 %1055  ;;  %v1099_v15 = vld [vmem:[%s2433_s5] sm:$0xff] }
 0x123   :  { %956 = vmatpush.bf16.msra.mxu0 %v908_v5 }
 0x124   :  { %v845_v18 = vpop.f32.mrf.mxu2 }
 0x125   :  { %v874_v19 = vpop.f32.mrf.mxu3  ;;  %v846_v27 = vadd.f32 %v845_v18, %v817_v4  ;;  %v1100_v18 = vld [vmem:[%s2433_s5 + $0x8] sm:$0xff] }
 0x126   :  { %1297 = vperm.xlu2 %1805, %v2281_v22   ;;  %v1734_v22 = vld [vmem:[%s2432_s2 + $0x18] sm:$0xff] }
 0x127   :  { %957 = vmatpush.bf16.msra.mxu0 %v907_v58  ;;  %v875_v36 = vadd.f32 %v874_v19, %v846_v27  ;;  %v1010_v58 = vpop.permute.xlu2 %1009 }
 0x129   :  { %v1066_v1 = vpop.permute.xlu0 %1065  ;;  %v1071_v6 = vpop.permute.xlu1 %1070 }
 0x12a   :  { %1635 = vmatmul.msk.bf16.vlgmr.msra.gmra.mxu0 %vm937_vm0, %v1731_v21 }
 0x12c   :  { %v847_v28 = vpop.f32.mrf.mxu2 }
 0x12d   :  { %v876_v30 = vpop.f32.mrf.mxu3  ;;  %v848_v31 = vadd.f32 %v847_v28, %v819_v26 }
 0x12f   :  { %v877_v37 = vadd.f32 %v876_v30, %v848_v31  ;;  %v1015_v61 = vpop.permute.xlu2 %1014 }
 0x131   :  { %v1135_v24 = vpack.c.bf16 %v877_v37, %v875_v36  ;;  %v2369_v7 = vpop.permute.xlu0 %1080  ;;  %v1217_v16 = vpop.permute.xlu1 %1216 }
 0x134   :  { %v850_v39 = vpop.f32.mrf.mxu2 }
 0x135   :  { %v879_v40 = vpop.f32.mrf.mxu3  ;;  %v851_v44 = vadd.f32 %v850_v39, %v822_v34 }
 0x137   :  { %v880_v48 = vadd.f32 %v879_v40, %v851_v44  ;;  %v1046_v0 = vpop.permute.xlu2 %1045 }
 0x139   :  { %v1227_v26 = vpop.permute.xlu0 %1226  ;;  %v1232_v28 = vpop.permute.xlu1 %1231 }
 0x13a   :  { %1636 = vmatmul.msk.bf16.gmra.mxu0 %vm937_vm0, %v1732_v42 }
 0x13c   :  { %v852_v46 = vpop.f32.mrf.mxu2 }
 0x13d   :  { %v853_v35 = vadd.f32 %v852_v46, %v824_v8  ;;  %v881_v47 = vpop.f32.mrf.mxu3 }
 0x13f   :  { %v882_v49 = vadd.f32 %v881_v47, %v853_v35 }
 0x141   :  { %v1136_v32 = vpack.c.bf16 %v882_v49, %v880_v48  ;;  %v2386_v38 = vpop.permute.xlu0 %1241  ;;  %v2388_v42 = vpop.permute.xlu1 %1246 }
 0x143   :  { %1183 = vmatpush.bf16.msra.mxu1 %v1136_v32 }
 0x147   :  { %1184 = vmatpush.bf16.msra.mxu1 %v1135_v24  ;;  %v1101_v24 = vld [vmem:[%s2433_s5 + $0x10] sm:$0xff] }
 0x149   :  { %v1273_v35 = vpop.permute.xlu0 %1272 }
 0x14a   :  { %1655 = vmatmul.msk.bf16.vlgmr.msra.gmra.mxu1 %vm937_vm0, %v1735_v50  ;;  %1637 = vmatmul.msk.bf16.gmra.mxu0 %vm937_vm0, %v1733_v14 }
 0x150   :  { %v1061_v9 = vpop.permute.xlu2 %1060 }
 0x158   :  { %v1076_v21 = vpop.permute.xlu2 %1075 }
 0x15a   :  { %1656 = vmatmul.msk.bf16.gmra.mxu1 %vm937_vm0, %v1736_v51  ;;  %1638 = vmatmul.msk.bf16.gmra.mxu0 %vm937_vm0, %v1734_v22  ;;  %v1278_v51 = vpop.permute.xlu1 %1277 }
 0x160   :  { %v1222_v17 = vpop.permute.xlu2 %1221 }
 0x168   :  { %v1237_v8 = vpop.permute.xlu2 %1236 }
 0x16a   :  { %1657 = vmatmul.msk.bf16.gmra.mxu1 %vm937_vm0, %v1737_v53 }
 0x17a   :  { %1658 = vmatmul.msk.bf16.gmra.mxu1 %vm937_vm0, %v1738_v52 }
 0x1a7   :  { %v959_v2 = vpop.f32.mrf.mxu0 }
 0x1a8   :  { %v1027_v3 = vmul.f32 %v990_v54, %v959_v2 }
 0x1aa   :  { %v1083_v10 = vadd.f32 %v1046_v0, %v1027_v3 }
 0x1ac   :  { %v1091_v13 = vmax.f32 %v1083_v10, 0.0 }
 0x1ae   :  { %v1107_v20 = vmul.f32 %v1099_v15, %v1091_v13 }
 0x1af   :  { %v961_v11 = vpop.f32.mrf.mxu0 }
 0x1b0   :  { %v1028_v12 = vmul.f32 %v995_v56, %v961_v11  ;;  %v1104_v56 = vld [vmem:[%s2433_s5 + $0x28] sm:$0xff] }
 0x1b2   :  { %v1084_v5 = vadd.f32 %v1051_v62, %v1028_v12 }
 0x1b4   :  { %v1092_v19 = vmax.f32 %v1084_v5, 0.0 }
 0x1b6   :  { %v1108_v23 = vmul.f32 %v1100_v18, %v1092_v19 }
 0x1b7   :  { %v964_v4 = vpop.f32.mrf.mxu0 }
 0x1b8   :  { %v1742_v25 = vpack.c.bf16 %v1108_v23, %v1107_v20  ;;  %v1029_v27 = vmul.f32 %v1000_v55, %v964_v4  ;;  %v1103_v55 = vld [vmem:[%s2433_s5 + $0x20] sm:$0xff]  ;;  %v1288_v20 = vpop.permute.xlu0 %1287 }
 0x1ba   :  { %1743 = vst [vmem:[%s2434_s6] sm:$0xff] %v1742_v25   ;;  %v1085_v30 = vadd.f32 %v1056_v63, %v1029_v27 }
 0x1bc   :  { %v1093_v36 = vmax.f32 %v1085_v30, 0.0 }
 0x1be   :  { %v1109_v40 = vmul.f32 %v1101_v24, %v1093_v36 }
 0x1bf   :  { %v966_v31 = vpop.f32.mrf.mxu0 }
 0x1c0   :  { %v1030_v33 = vmul.f32 %v1005_v57, %v966_v31  ;;  %v1252_v57 = vpop.permute.xlu2 %1251 }
 0x1c2   :  { %v1086_v37 = vadd.f32 %v1061_v9, %v1030_v33 }
 0x1c4   :  { %v1094_v39 = vmax.f32 %v1086_v37, 0.0 }
 0x1c6   :  { %v1110_v41 = vmul.f32 %v1102_v29, %v1094_v39 }
 0x1c7   :  { %v1186_v43 = vpop.f32.mrf.mxu1  ;;  %v969_v45 = vpop.f32.mrf.mxu0 }
 0x1c8   :  { %v1747_v34 = vpack.c.bf16 %v1110_v41, %v1109_v40  ;;  %v1254_v44 = vmul.f32 %v1217_v16, %v1186_v43  ;;  %v1031_v46 = vmul.f32 %v1010_v58, %v969_v45  ;;  %v1283_v12 = vpop.permute.xlu2 %1282 }
 0x1ca   :  { %1779 = vst [vmem:[%s2434_s6 + $0x8] sm:$0xff] %v1747_v34   ;;  %v1087_v47 = vadd.f32 %v1066_v1, %v1031_v46  ;;  %v1310_v48 = vadd.f32 %v1273_v35, %v1254_v44 }
 0x1cc   :  { %v1095_v22 = vmax.f32 %v1087_v47, 0.0  ;;  %v1318_v54 = vmax.f32 %v1310_v48, 0.0  ;;  %v1303_v48 = vpop.permute.xlu0 %1302 }
 0x1ce   :  { %v1111_v63 = vmul.f32 %v1103_v55, %v1095_v22 }
 0x1cf   :  { %v1188_v49 = vpop.f32.mrf.mxu1  ;;  %v971_v32 = vpop.f32.mrf.mxu0 }
 0x1d0   :  { %v1255_v50 = vmul.f32 %v1222_v17, %v1188_v49  ;;  %v1032_v14 = vmul.f32 %v1015_v61, %v971_v32  ;;  %v1334_v61 = vmul.f32 %v1318_v54, %v1099_v15 }
 0x1d2   :  { %v1088_v53 = vadd.f32 %v1071_v6, %v1032_v14  ;;  %v1311_v52 = vadd.f32 %v1278_v51, %v1255_v50 }
 0x1d4   :  { %v1096_v58 = vmax.f32 %v1088_v53, 0.0  ;;  %v1319_v62 = vmax.f32 %v1311_v52, 0.0 }
 0x1d6   :  { %v1112_v0 = vmul.f32 %v1104_v56, %v1096_v58  ;;  %v1335_v1 = vmul.f32 %v1319_v62, %v1100_v18 }
 0x1d7   :  { %v1191_v2 = vpop.f32.mrf.mxu1  ;;  %v974_v3 = vpop.f32.mrf.mxu0 }
 0x1d8   :  { %v1752_v6 = vpack.c.bf16 %v1112_v0, %v1111_v63  ;;  %v1762_v9 = vpack.c.bf16 %v1335_v1, %v1334_v61  ;;  %v1256_v10 = vmul.f32 %v1227_v26, %v1191_v2  ;;  %v1033_v11 = vmul.f32 %v2365_v59, %v974_v3  ;;  %v1105_v59 = vld [vmem:[%s2433_s5 + $0x30] sm:$0xff] }
 0x1da   :  { %1780 = vst [vmem:[%s2434_s6 + $0x10] sm:$0xff] %v1752_v6   ;;  %v1089_v13 = vadd.f32 %v1076_v21, %v1033_v11  ;;  %v1312_v5 = vadd.f32 %v1283_v12, %v1256_v10  ;;  %v1106_v21 = vld [vmem:[%s2433_s5 + $0x38] sm:$0xff] }
 0x1db   :  { %1782 = vst [vmem:[%s2434_s6 + $0x20] sm:$0xff] %v1762_v9  }
 0x1dc   :  { %v1097_v23 = vmax.f32 %v1089_v13, 0.0  ;;  %v1320_v26 = vmax.f32 %v1312_v5, 0.0 }
 0x1de   :  { %v1113_v31 = vmul.f32 %v1105_v59, %v1097_v23 }
 0x1df   :  { %v1193_v16 = vpop.f32.mrf.mxu1  ;;  %v976_v15 = vpop.f32.mrf.mxu0 }
 0x1e0   :  { %v1257_v18 = vmul.f32 %v1232_v28, %v1193_v16  ;;  %v1034_v19 = vmul.f32 %v2367_v60, %v976_v15  ;;  %v1336_v60 = vmul.f32 %v1320_v26, %v1101_v24 }
 0x1e2   :  { %v1313_v4 = vadd.f32 %v1288_v20, %v1257_v18  ;;  %v1090_v25 = vadd.f32 %v2369_v7, %v1034_v19  ;;  %v1293_v7 = vpop.permute.xlu1 %1292 }
 0x1e4   :  { %v1321_v27 = vmax.f32 %v1313_v4, 0.0  ;;  %v1098_v30 = vmax.f32 %v1090_v25, 0.0 }
 0x1e6   :  { %v1337_v28 = vmul.f32 %v1321_v27, %v1102_v29  ;;  %v1114_v17 = vmul.f32 %v1106_v21, %v1098_v30  ;;  %v1298_v29 = vpop.permute.xlu2 %1297 }
 0x1e7   :  { %v1196_v33 = vpop.f32.mrf.mxu1 }
 0x1e8   :  { %v1757_v36 = vpack.c.bf16 %v1114_v17, %v1113_v31  ;;  %v1767_v37 = vpack.c.bf16 %v1337_v28, %v1336_v60  ;;  %v1258_v39 = vmul.f32 %v1237_v8, %v1196_v33 }
 0x1ea   :  { %1781 = vst [vmem:[%s2434_s6 + $0x18] sm:$0xff] %v1757_v36   ;;  %v1314_v40 = vadd.f32 %v1293_v7, %v1258_v39  ;;  %v1308_v14 = vpop.permute.xlu1 %1307 }
 0x1eb   :  { %1783 = vst [vmem:[%s2434_s6 + $0x28] sm:$0xff] %v1767_v37  }
 0x1ec   :  { %v1322_v45 = vmax.f32 %v1314_v40, 0.0 }
 0x1ee   :  { %v1338_v44 = vmul.f32 %v1322_v45, %v1103_v55 }
 0x1ef   :  { %v1198_v41 = vpop.f32.mrf.mxu1 }
 0x1f0   :  { %v1259_v43 = vmul.f32 %v2386_v38, %v1198_v41 }
 0x1f2   :  { %v1315_v24 = vadd.f32 %v1298_v29, %v1259_v43 }
 0x1f4   :  { %v1323_v34 = vmax.f32 %v1315_v24, 0.0 }
 0x1f6   :  { %v1339_v46 = vmul.f32 %v1323_v34, %v1104_v56 }
 0x1f7   :  { %v1201_v8 = vpop.f32.mrf.mxu1 }
 0x1f8   :  { %v1772_v35 = vpack.c.bf16 %v1339_v46, %v1338_v44  ;;  %v1260_v47 = vmul.f32 %v2388_v42, %v1201_v8 }
 0x1fa   :  { %1784 = vst [vmem:[%s2434_s6 + $0x30] sm:$0xff] %v1772_v35   ;;  %v1316_v49 = vadd.f32 %v1303_v48, %v1260_v47 }
 0x1fc   :  { %v1324_v38 = vmax.f32 %v1316_v49, 0.0 }
 0x1fe   :  { %v1340_v53 = vmul.f32 %v1324_v38, %v1105_v59 }
 0x1ff   :  { %v1203_v32 = vpop.f32.mrf.mxu1 }
 0x200   :  { %v1261_v50 = vmul.f32 %v1252_v57, %v1203_v32 }
 0x202   :  { %v1317_v51 = vadd.f32 %v1308_v14, %v1261_v50 }
 0x204   :  { %v1325_v22 = vmax.f32 %v1317_v51, 0.0 }
 0x206   :  { %v1341_v52 = vmul.f32 %v1325_v22, %v1106_v21 }
 0x208   :  { %v1777_v54 = vpack.c.bf16 %v1341_v52, %v1340_v53 }
 0x20a   :  { %1785 = vst [vmem:[%s2434_s6 + $0x38] sm:$0xff] %v1777_v54  }

</bundles_post_ra>
